<compile_context>
chip_gen: v5e
topology: v5e:2x2
jax: 0.10.0
libtpu: 0.0.40
codegen_flags: <defaults>
</compile_context>

<pallas_src>
import functools
import math

import jax
import jax.numpy as jnp
from jax.experimental import pallas as pl
from jax.experimental.pallas import tpu as pltpu

# ---------------- small deterministic config ----------------
B = 2            # batch
S = 8            # sequence length
H = 64           # hidden_size
NH = 4           # num_attention_heads (num_key_value_heads == NH, no GQA repeat)
D = H // NH      # head_dim = 16
I = 128          # intermediate_size
E = 4            # num_experts
TOP_K = 2        # moe_type == "top2"
EPS = 1e-6
ROPE_THETA = 10000.0


# ---------------- fused decoder-layer kernel ----------------
def _decoder_layer_kernel(x_ref, ln1_ref, ln2_ref, wqkv_ref, wo_ref, wr_ref,
                          wgu_ref, wd_ref, cos_ref, sin_ref,
                          out_ref, logits_ref, *,
                          scale, eps, num_heads, head_dim, inter, n_experts):
    x = x_ref[0].astype(jnp.float32)                      # (S, H): one batch per grid step
    seq, hidden = x.shape

    def rms(v, w):                                        # RMSNorm in f32
        var = jnp.mean(v * v, axis=-1, keepdims=True)
        return v * jax.lax.rsqrt(var + eps) * w

    # ----- input_layernorm + fused QKV projection (lane-dense 3H-wide output) -----
    hs = rms(x, ln1_ref[...].astype(jnp.float32))
    qkv = jnp.dot(hs, wqkv_ref[...], preferred_element_type=jnp.float32)    # (S, 3H)

    # ----- RoPE + causal self-attention (per head, everything in VMEM) -----
    cos = cos_ref[...].astype(jnp.float32)                # (S, D)
    sin = sin_ref[...].astype(jnp.float32)
    half = head_dim // 2

    def rope(v):                                          # (S, D)
        rot = jnp.concatenate([-v[:, half:], v[:, :half]], axis=-1)
        return v * cos + rot * sin

    row = jax.lax.broadcasted_iota(jnp.int32, (seq, seq), 0)
    col = jax.lax.broadcasted_iota(jnp.int32, (seq, seq), 1)
    causal = col <= row
    neg = jnp.finfo(jnp.float32).min

    head_outs = []
    for h in range(num_heads):
        qh = rope(qkv[:, h * head_dim:(h + 1) * head_dim])
        kh = rope(qkv[:, hidden + h * head_dim:hidden + (h + 1) * head_dim])
        vh = qkv[:, 2 * hidden + h * head_dim:2 * hidden + (h + 1) * head_dim]
        s = jnp.dot(qh, kh.T, preferred_element_type=jnp.float32) * scale
        s = jnp.where(causal, s, neg)
        m = jnp.max(s, axis=-1, keepdims=True)
        p = jnp.exp(s - m)
        p = p / jnp.sum(p, axis=-1, keepdims=True)
        head_outs.append(jnp.dot(p, vh, preferred_element_type=jnp.float32))
    attn = jnp.concatenate(head_outs, axis=-1)            # (S, H)

    attn_out = jnp.dot(attn, wo_ref[...], preferred_element_type=jnp.float32)
    h1 = x + attn_out                                     # first residual

    # ----- post_attention_layernorm + router -----
    hs2 = rms(h1, ln2_ref[...].astype(jnp.float32))
    logits = jnp.dot(hs2, wr_ref[...], preferred_element_type=jnp.float32)  # (S, E)
    logits_ref[...] = logits.astype(logits_ref.dtype)

    lm = jnp.max(logits, axis=-1, keepdims=True)
    le = jnp.exp(logits - lm)
    rw = le / jnp.sum(le, axis=-1, keepdims=True)          # softmax over experts

    # ----- top-2 selection -> dense per-(token, expert) weights (0 if unselected) -----
    colf = jax.lax.broadcasted_iota(jnp.int32, rw.shape, 1).astype(jnp.float32)
    big = jnp.float32(n_experts)
    m1 = jnp.max(rw, axis=-1, keepdims=True)
    i1 = jnp.min(jnp.where(rw == m1, colf, big), axis=-1, keepdims=True)
    mask1 = colf == i1                                     # first occurrence of max
    rw_m = jnp.where(mask1, -jnp.inf, rw)
    m2 = jnp.max(rw_m, axis=-1, keepdims=True)
    i2 = jnp.min(jnp.where(rw_m == m2, colf, big), axis=-1, keepdims=True)
    mask2 = colf == i2
    denom = m1 + m2                                        # top-k renormalization
    dense_rw = (jnp.where(mask1, m1, 0.0) + jnp.where(mask2, m2, 0.0)) / denom  # (S, E)

    # ----- MoE experts: fused gate+up matmul, SiLU, down proj, weighted f32 accumulate -----
    moe = jnp.zeros_like(h1)
    for e in range(n_experts):
        gu = jnp.dot(hs2, wgu_ref[e], preferred_element_type=jnp.float32)   # (S, 2I)
        g = gu[:, :inter]
        u = gu[:, inter:]
        act = g * jax.nn.sigmoid(g) * u                                     # SiLU(g) * u
        y = jnp.dot(act, wd_ref[e], preferred_element_type=jnp.float32)     # (S, H)
        moe = moe + dense_rw[:, e:e + 1] * y

    out_ref[0] = (h1 + moe).astype(out_ref.dtype)          # second residual


def decoder_layer_forward(x, kp):
    """x: (B, S, H). kp: packed / pre-transposed params from pack_params()."""
    Bb, Ss, Hh = x.shape
    kernel = functools.partial(
        _decoder_layer_kernel, scale=1.0 / math.sqrt(D), eps=EPS,
        num_heads=NH, head_dim=D, inter=I, n_experts=E)
    out, logits = pl.pallas_call(
        kernel,
        out_shape=(jax.ShapeDtypeStruct((Bb, Ss, Hh), x.dtype),
                   jax.ShapeDtypeStruct((Bb * Ss, E), jnp.float32)),
        grid=(Bb,),
        in_specs=[
            pl.BlockSpec((1, Ss, Hh), lambda b: (b, 0, 0)),        # x (one batch)
            pl.BlockSpec((1, Hh), lambda b: (0, 0)),               # input_layernorm
            pl.BlockSpec((1, Hh), lambda b: (0, 0)),               # post_attention_layernorm
            pl.BlockSpec((Hh, 3 * Hh), lambda b: (0, 0)),          # fused qkv^T
            pl.BlockSpec((Hh, Hh), lambda b: (0, 0)),              # o_proj^T
            pl.BlockSpec((Hh, E), lambda b: (0, 0)),               # router^T
            pl.BlockSpec((E, Hh, 2 * I), lambda b: (0, 0, 0)),     # fused gate|up ^T
            pl.BlockSpec((E, I, Hh), lambda b: (0, 0, 0)),         # down^T
            pl.BlockSpec((Ss, D), lambda b: (0, 0)),               # rope cos
            pl.BlockSpec((Ss, D), lambda b: (0, 0)),               # rope sin
        ],
        out_specs=(
            pl.BlockSpec((1, Ss, Hh), lambda b: (b, 0, 0)),        # layer output
            pl.BlockSpec((Ss, E), lambda b: (b, 0)),               # router logits
        ),
        compiler_params=pltpu.CompilerParams(dimension_semantics=("parallel",)),
    )(x, kp["ln1"], kp["ln2"], kp["wqkvT"], kp["woT"], kp["wrT"],
      kp["wguT"], kp["wdT"], kp["cos"], kp["sin"])
    return out, logits


# ---------------- RoPE tables ----------------
def _rope_cos_sin(seq_len, dim, theta=ROPE_THETA):
    inv_freq = 1.0 / (theta ** (jnp.arange(0, dim, 2, dtype=jnp.float32) / dim))
    pos = jnp.arange(seq_len, dtype=jnp.float32)
    freqs = jnp.outer(pos, inv_freq)                 # (S, dim/2)
    emb = jnp.concatenate([freqs, freqs], axis=-1)   # (S, dim)
    return jnp.cos(emb), jnp.sin(emb)


def _rotate_half(x):
    d = x.shape[-1] // 2
    return jnp.concatenate([-x[..., d:], x[..., :d]], axis=-1)


# ---------------- pure-JAX reference (PyTorch semantics, for sanity check) ----------------
def _rmsnorm_ref(x, w, eps=EPS):
    xf = x.astype(jnp.float32)
    var = jnp.mean(xf * xf, axis=-1, keepdims=True)
    return (w * (xf * jax.lax.rsqrt(var + eps))).astype(x.dtype)


def _attn_ref(q, k, v, scale):
    s = jnp.einsum("bqd,bkd->bqk", q, k) * scale
    n = q.shape[1]
    mask = jnp.tril(jnp.ones((n, n), bool))
    s = jnp.where(mask, s, jnp.finfo(jnp.float32).min)
    p = jax.nn.softmax(s, axis=-1)
    return jnp.einsum("bqk,bkd->bqd", p, v)


def _moe_ref(x, wg, wu, wd, dense_rw):
    out = jnp.zeros_like(x)
    for e in range(E):
        h = jax.nn.silu(x @ wg[e].T) * (x @ wu[e].T)
        out = out + dense_rw[:, e:e + 1] * (h @ wd[e].T)
    return out


def decoder_layer_reference(x, p):
    Bb, Ss, Hh = x.shape
    T = Bb * Ss
    residual = x.reshape(T, Hh)
    hs = _rmsnorm_ref(residual, p["input_ln"])
    q = (hs @ p["wq"].T).reshape(Bb, Ss, NH, D).transpose(0, 2, 1, 3)
    k = (hs @ p["wk"].T).reshape(Bb, Ss, NH, D).transpose(0, 2, 1, 3)
    v = (hs @ p["wv"].T).reshape(Bb, Ss, NH, D).transpose(0, 2, 1, 3)
    cos, sin = _rope_cos_sin(Ss, D)
    q = q * cos + _rotate_half(q) * sin
    k = k * cos + _rotate_half(k) * sin
    attn = _attn_ref(q.reshape(Bb * NH, Ss, D), k.reshape(Bb * NH, Ss, D),
                     v.reshape(Bb * NH, Ss, D), 1.0 / math.sqrt(D))
    attn = attn.reshape(Bb, NH, Ss, D).transpose(0, 2, 1, 3).reshape(T, Hh)
    h1 = residual + attn @ p["wo"].T
    hs2 = _rmsnorm_ref(h1, p["post_ln"])
    router_logits = hs2 @ p["router"].T
    rw = jax.nn.softmax(router_logits, axis=1)
    vals, idx = jax.lax.top_k(rw, TOP_K)
    vals = vals / jnp.sum(vals, axis=-1, keepdims=True)
    dense_rw = jnp.zeros((T, E), jnp.float32).at[jnp.arange(T)[:, None], idx].add(vals)
    layer_output = _moe_ref(hs2, p["wg"], p["wu"], p["wd"], dense_rw)
    return (h1 + layer_output).reshape(Bb, Ss, Hh), router_logits


# ---------------- deterministic parameter init + one-time packing ----------------
def init_params(key):
    ks = jax.random.split(key, 8)

    def w(k, shape, scale=0.02):
        return scale * jax.random.normal(k, shape, dtype=jnp.float32)

    return {
        "input_ln": jnp.ones((H,), jnp.float32),
        "post_ln": jnp.ones((H,), jnp.float32),
        "wq": w(ks[0], (H, H)),
        "wk": w(ks[1], (H, H)),
        "wv": w(ks[2], (H, H)),
        "wo": w(ks[3], (H, H)),
        "router": w(ks[4], (E, H)),
        "wg": w(ks[5], (E, I, H)),   # gate_proj (out=I, in=H) per expert
        "wu": w(ks[6], (E, I, H)),   # up_proj
        "wd": w(ks[7], (E, H, I)),   # down_proj (out=H, in=I)
    }


def pack_params(p):
    """One-time re-layout of weights into kernel-friendly (pre-transposed, fused) form."""
    cos, sin = _rope_cos_sin(S, D)
    return {
        "ln1": p["input_ln"].reshape(1, H),
        "ln2": p["post_ln"].reshape(1, H),
        "wqkvT": jnp.concatenate([p["wq"].T, p["wk"].T, p["wv"].T], axis=1),   # (H, 3H)
        "woT": p["wo"].T,                                                      # (H, H)
        "wrT": p["router"].T,                                                  # (H, E)
        "wguT": jnp.concatenate([jnp.transpose(p["wg"], (0, 2, 1)),
                                 jnp.transpose(p["wu"], (0, 2, 1))], axis=2),  # (E, H, 2I)
        "wdT": jnp.transpose(p["wd"], (0, 2, 1)),                              # (E, I, H)
        "cos": cos,                                                            # (S, D)
        "sin": sin,                                                            # (S, D)
    }


if __name__ == "__main__":
    key = jax.random.PRNGKey(0)
    pkey, xkey = jax.random.split(key)
    params = init_params(pkey)
    packed = pack_params(params)          # pre-transposed / fused once, outside the forward
    x = jax.random.normal(xkey, (B, S, H), dtype=jnp.float32)

    fwd = jax.jit(decoder_layer_forward)
    out, router_logits = fwd(x, packed)
    out = jax.block_until_ready(out)
    router_logits = jax.block_until_ready(router_logits)

    # sanity check against a pure-JAX reference of the same math
    out_ref, logits_ref = decoder_layer_reference(x, params)
    assert out.shape == (B, S, H) and router_logits.shape == (B * S, E)
    assert jnp.allclose(out, out_ref, atol=1e-3, rtol=1e-3), \
        float(jnp.max(jnp.abs(out - out_ref)))
    assert jnp.allclose(router_logits, logits_ref, atol=1e-3, rtol=1e-3), \
        float(jnp.max(jnp.abs(router_logits - logits_ref)))

    print("KERNEL_OK")
</pallas_src>

<mosaic_0001>
module attributes {stable_mosaic.version = 11 : i64} {
  func.func @_decoder_layer_kernel(%arg0: i32, %arg1: memref<1x8x64xf32, #tpu.memory_space<vmem>>, %arg2: memref<1x64xf32, #tpu.memory_space<vmem>>, %arg3: memref<1x64xf32, #tpu.memory_space<vmem>>, %arg4: memref<64x192xf32, #tpu.memory_space<vmem>>, %arg5: memref<64x64xf32, #tpu.memory_space<vmem>>, %arg6: memref<64x4xf32, #tpu.memory_space<vmem>>, %arg7: memref<4x64x256xf32, #tpu.memory_space<vmem>>, %arg8: memref<4x128x64xf32, #tpu.memory_space<vmem>>, %arg9: memref<8x16xf32, #tpu.memory_space<vmem>>, %arg10: memref<8x16xf32, #tpu.memory_space<vmem>>, %arg11: memref<1x8x64xf32, #tpu.memory_space<vmem>>, %arg12: memref<8x4xf32, #tpu.memory_space<vmem>>) attributes {dimension_semantics = [#tpu.dimension_semantics<parallel>], iteration_bounds = array<i64: 2>, scalar_prefetch = 0 : i64, scratch_operands = 0 : i64, tpu.core_type = #tpu.core_type<tc>, window_params = [{transform_indices = @transform_0, window_bounds = array<i64: 1, 8, 64>}, {pipeline_mode = #tpu.pipeline_mode<synchronous>, transform_indices = @transform_1, window_bounds = array<i64: 1, 64>}, {pipeline_mode = #tpu.pipeline_mode<synchronous>, transform_indices = @transform_2, window_bounds = array<i64: 1, 64>}, {pipeline_mode = #tpu.pipeline_mode<synchronous>, transform_indices = @transform_3, window_bounds = array<i64: 64, 192>}, {pipeline_mode = #tpu.pipeline_mode<synchronous>, transform_indices = @transform_4, window_bounds = array<i64: 64, 64>}, {pipeline_mode = #tpu.pipeline_mode<synchronous>, transform_indices = @transform_5, window_bounds = array<i64: 64, 4>}, {pipeline_mode = #tpu.pipeline_mode<synchronous>, transform_indices = @transform_6, window_bounds = array<i64: 4, 64, 256>}, {pipeline_mode = #tpu.pipeline_mode<synchronous>, transform_indices = @transform_7, window_bounds = array<i64: 4, 128, 64>}, {pipeline_mode = #tpu.pipeline_mode<synchronous>, transform_indices = @transform_8, window_bounds = array<i64: 8, 16>}, {pipeline_mode = #tpu.pipeline_mode<synchronous>, transform_indices = @transform_9, window_bounds = array<i64: 8, 16>}, {transform_indices = @transform_10, window_bounds = array<i64: 1, 8, 64>}, {transform_indices = @transform_11, window_bounds = array<i64: 8, 4>}]} {
    %c0 = arith.constant 0 : index
    %c0_0 = arith.constant 0 : index
    %c0_1 = arith.constant 0 : index
    %0 = vector.load %arg1[%c0, %c0_0, %c0_1] : memref<1x8x64xf32, #tpu.memory_space<vmem>>, vector<1x8x64xf32>
    %1 = vector.shape_cast %0 : vector<1x8x64xf32> to vector<8x64xf32>
    %c0_2 = arith.constant 0 : index
    %c0_3 = arith.constant 0 : index
    %2 = vector.load %arg2[%c0_2, %c0_3] : memref<1x64xf32, #tpu.memory_space<vmem>>, vector<1x64xf32>
    %3 = arith.mulf %1, %1 : vector<8x64xf32>
    %cst = arith.constant dense<0.000000e+00> : vector<8xf32>
    %4 = vector.multi_reduction <add>, %3, %cst [1] : vector<8x64xf32> to vector<8xf32>
    %5 = vector.shape_cast %4 : vector<8xf32> to vector<8x1xf32>
    %cst_4 = arith.constant 6.400000e+01 : f32
    %6 = vector.broadcast %cst_4 : f32 to vector<8x1xf32>
    %7 = arith.divf %5, %6 : vector<8x1xf32>
    %cst_5 = arith.constant 9.99999997E-7 : f32
    %8 = vector.broadcast %cst_5 : f32 to vector<8x1xf32>
    %9 = arith.addf %7, %8 : vector<8x1xf32>
    %10 = math.rsqrt %9 : vector<8x1xf32>
    %11 = vector.broadcast %10 : vector<8x1xf32> to vector<8x64xf32>
    %12 = arith.mulf %1, %11 : vector<8x64xf32>
    %13 = vector.broadcast %2 : vector<1x64xf32> to vector<8x64xf32>
    %14 = arith.mulf %12, %13 : vector<8x64xf32>
    %c0_6 = arith.constant 0 : index
    %c0_7 = arith.constant 0 : index
    %15 = vector.load %arg4[%c0_6, %c0_7] : memref<64x192xf32, #tpu.memory_space<vmem>>, vector<64x192xf32>
    %cst_8 = arith.constant dense<0.000000e+00> : vector<8x192xf32>
    %16 = tpu.matmul %14, %15, %cst_8 {dimension_numbers = #tpu.dot_dimension_numbers<[1], [0], [0], [1], [0, 0, 1, 1], [], []>} : vector<8x64xf32>, vector<64x192xf32>, vector<8x192xf32> -> vector<8x192xf32>
    %c0_9 = arith.constant 0 : index
    %c0_10 = arith.constant 0 : index
    %17 = vector.load %arg9[%c0_9, %c0_10] : memref<8x16xf32, #tpu.memory_space<vmem>>, vector<8x16xf32>
    %c0_11 = arith.constant 0 : index
    %c0_12 = arith.constant 0 : index
    %18 = vector.load %arg10[%c0_11, %c0_12] : memref<8x16xf32, #tpu.memory_space<vmem>>, vector<8x16xf32>
    %19 = tpu.iota {dimensions = array<i32: 0>} : vector<8x8xi32>
    %20 = tpu.iota {dimensions = array<i32: 1>} : vector<8x8xi32>
    %21 = arith.cmpi sle, %20, %19 : vector<8x8xi32>
    %22 = vector.extract_strided_slice %16 {offsets = [0, 0], sizes = [8, 16], strides = [1, 1]} : vector<8x192xf32> to vector<8x16xf32>
    %23 = vector.extract_strided_slice %22 {offsets = [0, 8], sizes = [8, 8], strides = [1, 1]} : vector<8x16xf32> to vector<8x8xf32>
    %cst_13 = arith.constant 0.000000e+00 : f32
    %24 = vector.broadcast %cst_13 : f32 to vector<8x8xf32>
    %25 = arith.subf %24, %23 : vector<8x8xf32>
    %26 = vector.extract_strided_slice %22 {offsets = [0, 0], sizes = [8, 8], strides = [1, 1]} : vector<8x16xf32> to vector<8x8xf32>
    %27 = tpu.concatenate %25, %26 in 1 : vector<8x8xf32>, vector<8x8xf32> -> vector<8x16xf32>
    %28 = arith.mulf %22, %17 : vector<8x16xf32>
    %29 = arith.mulf %27, %18 : vector<8x16xf32>
    %30 = arith.addf %28, %29 : vector<8x16xf32>
    %31 = vector.extract_strided_slice %16 {offsets = [0, 64], sizes = [8, 16], strides = [1, 1]} : vector<8x192xf32> to vector<8x16xf32>
    %32 = vector.extract_strided_slice %31 {offsets = [0, 8], sizes = [8, 8], strides = [1, 1]} : vector<8x16xf32> to vector<8x8xf32>
    %cst_14 = arith.constant 0.000000e+00 : f32
    %33 = vector.broadcast %cst_14 : f32 to vector<8x8xf32>
    %34 = arith.subf %33, %32 : vector<8x8xf32>
    %35 = vector.extract_strided_slice %31 {offsets = [0, 0], sizes = [8, 8], strides = [1, 1]} : vector<8x16xf32> to vector<8x8xf32>
    %36 = tpu.concatenate %34, %35 in 1 : vector<8x8xf32>, vector<8x8xf32> -> vector<8x16xf32>
    %37 = arith.mulf %31, %17 : vector<8x16xf32>
    %38 = arith.mulf %36, %18 : vector<8x16xf32>
    %39 = arith.addf %37, %38 : vector<8x16xf32>
    %40 = vector.extract_strided_slice %16 {offsets = [0, 128], sizes = [8, 16], strides = [1, 1]} : vector<8x192xf32> to vector<8x16xf32>
    %41 = tpu.transpose %39, [1, 0] : vector<8x16xf32> -> vector<16x8xf32>
    %cst_15 = arith.constant dense<0.000000e+00> : vector<8x8xf32>
    %42 = tpu.matmul %30, %41, %cst_15 {dimension_numbers = #tpu.dot_dimension_numbers<[1], [0], [0], [1], [0, 0, 1, 1], [], []>} : vector<8x16xf32>, vector<16x8xf32>, vector<8x8xf32> -> vector<8x8xf32>
    %cst_16 = arith.constant 2.500000e-01 : f32
    %43 = vector.broadcast %cst_16 : f32 to vector<8x8xf32>
    %44 = arith.mulf %42, %43 : vector<8x8xf32>
    %cst_17 = arith.constant -3.40282347E+38 : f32
    %45 = vector.broadcast %cst_17 : f32 to vector<8x8xf32>
    %46 = arith.select %21, %44, %45 : vector<8x8xi1>, vector<8x8xf32>
    %cst_18 = arith.constant dense<0xFF800000> : vector<8xf32>
    %47 = vector.multi_reduction <maximumf>, %46, %cst_18 [1] : vector<8x8xf32> to vector<8xf32>
    %48 = vector.shape_cast %47 : vector<8xf32> to vector<8x1xf32>
    %49 = vector.broadcast %48 : vector<8x1xf32> to vector<8x8xf32>
    %50 = arith.subf %46, %49 : vector<8x8xf32>
    %51 = math.exp %50 : vector<8x8xf32>
    %cst_19 = arith.constant dense<0.000000e+00> : vector<8xf32>
    %52 = vector.multi_reduction <add>, %51, %cst_19 [1] : vector<8x8xf32> to vector<8xf32>
    %53 = vector.shape_cast %52 : vector<8xf32> to vector<8x1xf32>
    %54 = vector.broadcast %53 : vector<8x1xf32> to vector<8x8xf32>
    %55 = arith.divf %51, %54 : vector<8x8xf32>
    %cst_20 = arith.constant dense<0.000000e+00> : vector<8x16xf32>
    %56 = tpu.matmul %55, %40, %cst_20 {dimension_numbers = #tpu.dot_dimension_numbers<[1], [0], [0], [1], [0, 0, 1, 1], [], []>} : vector<8x8xf32>, vector<8x16xf32>, vector<8x16xf32> -> vector<8x16xf32>
    %57 = vector.extract_strided_slice %16 {offsets = [0, 16], sizes = [8, 16], strides = [1, 1]} : vector<8x192xf32> to vector<8x16xf32>
    %58 = vector.extract_strided_slice %57 {offsets = [0, 8], sizes = [8, 8], strides = [1, 1]} : vector<8x16xf32> to vector<8x8xf32>
    %cst_21 = arith.constant 0.000000e+00 : f32
    %59 = vector.broadcast %cst_21 : f32 to vector<8x8xf32>
    %60 = arith.subf %59, %58 : vector<8x8xf32>
    %61 = vector.extract_strided_slice %57 {offsets = [0, 0], sizes = [8, 8], strides = [1, 1]} : vector<8x16xf32> to vector<8x8xf32>
    %62 = tpu.concatenate %60, %61 in 1 : vector<8x8xf32>, vector<8x8xf32> -> vector<8x16xf32>
    %63 = arith.mulf %57, %17 : vector<8x16xf32>
    %64 = arith.mulf %62, %18 : vector<8x16xf32>
    %65 = arith.addf %63, %64 : vector<8x16xf32>
    %66 = vector.extract_strided_slice %16 {offsets = [0, 80], sizes = [8, 16], strides = [1, 1]} : vector<8x192xf32> to vector<8x16xf32>
    %67 = vector.extract_strided_slice %66 {offsets = [0, 8], sizes = [8, 8], strides = [1, 1]} : vector<8x16xf32> to vector<8x8xf32>
    %cst_22 = arith.constant 0.000000e+00 : f32
    %68 = vector.broadcast %cst_22 : f32 to vector<8x8xf32>
    %69 = arith.subf %68, %67 : vector<8x8xf32>
    %70 = vector.extract_strided_slice %66 {offsets = [0, 0], sizes = [8, 8], strides = [1, 1]} : vector<8x16xf32> to vector<8x8xf32>
    %71 = tpu.concatenate %69, %70 in 1 : vector<8x8xf32>, vector<8x8xf32> -> vector<8x16xf32>
    %72 = arith.mulf %66, %17 : vector<8x16xf32>
    %73 = arith.mulf %71, %18 : vector<8x16xf32>
    %74 = arith.addf %72, %73 : vector<8x16xf32>
    %75 = vector.extract_strided_slice %16 {offsets = [0, 144], sizes = [8, 16], strides = [1, 1]} : vector<8x192xf32> to vector<8x16xf32>
    %76 = tpu.transpose %74, [1, 0] : vector<8x16xf32> -> vector<16x8xf32>
    %cst_23 = arith.constant dense<0.000000e+00> : vector<8x8xf32>
    %77 = tpu.matmul %65, %76, %cst_23 {dimension_numbers = #tpu.dot_dimension_numbers<[1], [0], [0], [1], [0, 0, 1, 1], [], []>} : vector<8x16xf32>, vector<16x8xf32>, vector<8x8xf32> -> vector<8x8xf32>
    %cst_24 = arith.constant 2.500000e-01 : f32
    %78 = vector.broadcast %cst_24 : f32 to vector<8x8xf32>
    %79 = arith.mulf %77, %78 : vector<8x8xf32>
    %cst_25 = arith.constant -3.40282347E+38 : f32
    %80 = vector.broadcast %cst_25 : f32 to vector<8x8xf32>
    %81 = arith.select %21, %79, %80 : vector<8x8xi1>, vector<8x8xf32>
    %cst_26 = arith.constant dense<0xFF800000> : vector<8xf32>
    %82 = vector.multi_reduction <maximumf>, %81, %cst_26 [1] : vector<8x8xf32> to vector<8xf32>
    %83 = vector.shape_cast %82 : vector<8xf32> to vector<8x1xf32>
    %84 = vector.broadcast %83 : vector<8x1xf32> to vector<8x8xf32>
    %85 = arith.subf %81, %84 : vector<8x8xf32>
    %86 = math.exp %85 : vector<8x8xf32>
    %cst_27 = arith.constant dense<0.000000e+00> : vector<8xf32>
    %87 = vector.multi_reduction <add>, %86, %cst_27 [1] : vector<8x8xf32> to vector<8xf32>
    %88 = vector.shape_cast %87 : vector<8xf32> to vector<8x1xf32>
    %89 = vector.broadcast %88 : vector<8x1xf32> to vector<8x8xf32>
    %90 = arith.divf %86, %89 : vector<8x8xf32>
    %cst_28 = arith.constant dense<0.000000e+00> : vector<8x16xf32>
    %91 = tpu.matmul %90, %75, %cst_28 {dimension_numbers = #tpu.dot_dimension_numbers<[1], [0], [0], [1], [0, 0, 1, 1], [], []>} : vector<8x8xf32>, vector<8x16xf32>, vector<8x16xf32> -> vector<8x16xf32>
    %92 = vector.extract_strided_slice %16 {offsets = [0, 32], sizes = [8, 16], strides = [1, 1]} : vector<8x192xf32> to vector<8x16xf32>
    %93 = vector.extract_strided_slice %92 {offsets = [0, 8], sizes = [8, 8], strides = [1, 1]} : vector<8x16xf32> to vector<8x8xf32>
    %cst_29 = arith.constant 0.000000e+00 : f32
    %94 = vector.broadcast %cst_29 : f32 to vector<8x8xf32>
    %95 = arith.subf %94, %93 : vector<8x8xf32>
    %96 = vector.extract_strided_slice %92 {offsets = [0, 0], sizes = [8, 8], strides = [1, 1]} : vector<8x16xf32> to vector<8x8xf32>
    %97 = tpu.concatenate %95, %96 in 1 : vector<8x8xf32>, vector<8x8xf32> -> vector<8x16xf32>
    %98 = arith.mulf %92, %17 : vector<8x16xf32>
    %99 = arith.mulf %97, %18 : vector<8x16xf32>
    %100 = arith.addf %98, %99 : vector<8x16xf32>
    %101 = vector.extract_strided_slice %16 {offsets = [0, 96], sizes = [8, 16], strides = [1, 1]} : vector<8x192xf32> to vector<8x16xf32>
    %102 = vector.extract_strided_slice %101 {offsets = [0, 8], sizes = [8, 8], strides = [1, 1]} : vector<8x16xf32> to vector<8x8xf32>
    %cst_30 = arith.constant 0.000000e+00 : f32
    %103 = vector.broadcast %cst_30 : f32 to vector<8x8xf32>
    %104 = arith.subf %103, %102 : vector<8x8xf32>
    %105 = vector.extract_strided_slice %101 {offsets = [0, 0], sizes = [8, 8], strides = [1, 1]} : vector<8x16xf32> to vector<8x8xf32>
    %106 = tpu.concatenate %104, %105 in 1 : vector<8x8xf32>, vector<8x8xf32> -> vector<8x16xf32>
    %107 = arith.mulf %101, %17 : vector<8x16xf32>
    %108 = arith.mulf %106, %18 : vector<8x16xf32>
    %109 = arith.addf %107, %108 : vector<8x16xf32>
    %110 = vector.extract_strided_slice %16 {offsets = [0, 160], sizes = [8, 16], strides = [1, 1]} : vector<8x192xf32> to vector<8x16xf32>
    %111 = tpu.transpose %109, [1, 0] : vector<8x16xf32> -> vector<16x8xf32>
    %cst_31 = arith.constant dense<0.000000e+00> : vector<8x8xf32>
    %112 = tpu.matmul %100, %111, %cst_31 {dimension_numbers = #tpu.dot_dimension_numbers<[1], [0], [0], [1], [0, 0, 1, 1], [], []>} : vector<8x16xf32>, vector<16x8xf32>, vector<8x8xf32> -> vector<8x8xf32>
    %cst_32 = arith.constant 2.500000e-01 : f32
    %113 = vector.broadcast %cst_32 : f32 to vector<8x8xf32>
    %114 = arith.mulf %112, %113 : vector<8x8xf32>
    %cst_33 = arith.constant -3.40282347E+38 : f32
    %115 = vector.broadcast %cst_33 : f32 to vector<8x8xf32>
    %116 = arith.select %21, %114, %115 : vector<8x8xi1>, vector<8x8xf32>
    %cst_34 = arith.constant dense<0xFF800000> : vector<8xf32>
    %117 = vector.multi_reduction <maximumf>, %116, %cst_34 [1] : vector<8x8xf32> to vector<8xf32>
    %118 = vector.shape_cast %117 : vector<8xf32> to vector<8x1xf32>
    %119 = vector.broadcast %118 : vector<8x1xf32> to vector<8x8xf32>
    %120 = arith.subf %116, %119 : vector<8x8xf32>
    %121 = math.exp %120 : vector<8x8xf32>
    %cst_35 = arith.constant dense<0.000000e+00> : vector<8xf32>
    %122 = vector.multi_reduction <add>, %121, %cst_35 [1] : vector<8x8xf32> to vector<8xf32>
    %123 = vector.shape_cast %122 : vector<8xf32> to vector<8x1xf32>
    %124 = vector.broadcast %123 : vector<8x1xf32> to vector<8x8xf32>
    %125 = arith.divf %121, %124 : vector<8x8xf32>
    %cst_36 = arith.constant dense<0.000000e+00> : vector<8x16xf32>
    %126 = tpu.matmul %125, %110, %cst_36 {dimension_numbers = #tpu.dot_dimension_numbers<[1], [0], [0], [1], [0, 0, 1, 1], [], []>} : vector<8x8xf32>, vector<8x16xf32>, vector<8x16xf32> -> vector<8x16xf32>
    %127 = vector.extract_strided_slice %16 {offsets = [0, 48], sizes = [8, 16], strides = [1, 1]} : vector<8x192xf32> to vector<8x16xf32>
    %128 = vector.extract_strided_slice %127 {offsets = [0, 8], sizes = [8, 8], strides = [1, 1]} : vector<8x16xf32> to vector<8x8xf32>
    %cst_37 = arith.constant 0.000000e+00 : f32
    %129 = vector.broadcast %cst_37 : f32 to vector<8x8xf32>
    %130 = arith.subf %129, %128 : vector<8x8xf32>
    %131 = vector.extract_strided_slice %127 {offsets = [0, 0], sizes = [8, 8], strides = [1, 1]} : vector<8x16xf32> to vector<8x8xf32>
    %132 = tpu.concatenate %130, %131 in 1 : vector<8x8xf32>, vector<8x8xf32> -> vector<8x16xf32>
    %133 = arith.mulf %127, %17 : vector<8x16xf32>
    %134 = arith.mulf %132, %18 : vector<8x16xf32>
    %135 = arith.addf %133, %134 : vector<8x16xf32>
    %136 = vector.extract_strided_slice %16 {offsets = [0, 112], sizes = [8, 16], strides = [1, 1]} : vector<8x192xf32> to vector<8x16xf32>
    %137 = vector.extract_strided_slice %136 {offsets = [0, 8], sizes = [8, 8], strides = [1, 1]} : vector<8x16xf32> to vector<8x8xf32>
    %cst_38 = arith.constant 0.000000e+00 : f32
    %138 = vector.broadcast %cst_38 : f32 to vector<8x8xf32>
    %139 = arith.subf %138, %137 : vector<8x8xf32>
    %140 = vector.extract_strided_slice %136 {offsets = [0, 0], sizes = [8, 8], strides = [1, 1]} : vector<8x16xf32> to vector<8x8xf32>
    %141 = tpu.concatenate %139, %140 in 1 : vector<8x8xf32>, vector<8x8xf32> -> vector<8x16xf32>
    %142 = arith.mulf %136, %17 : vector<8x16xf32>
    %143 = arith.mulf %141, %18 : vector<8x16xf32>
    %144 = arith.addf %142, %143 : vector<8x16xf32>
    %145 = vector.extract_strided_slice %16 {offsets = [0, 176], sizes = [8, 16], strides = [1, 1]} : vector<8x192xf32> to vector<8x16xf32>
    %146 = tpu.transpose %144, [1, 0] : vector<8x16xf32> -> vector<16x8xf32>
    %cst_39 = arith.constant dense<0.000000e+00> : vector<8x8xf32>
    %147 = tpu.matmul %135, %146, %cst_39 {dimension_numbers = #tpu.dot_dimension_numbers<[1], [0], [0], [1], [0, 0, 1, 1], [], []>} : vector<8x16xf32>, vector<16x8xf32>, vector<8x8xf32> -> vector<8x8xf32>
    %cst_40 = arith.constant 2.500000e-01 : f32
    %148 = vector.broadcast %cst_40 : f32 to vector<8x8xf32>
    %149 = arith.mulf %147, %148 : vector<8x8xf32>
    %cst_41 = arith.constant -3.40282347E+38 : f32
    %150 = vector.broadcast %cst_41 : f32 to vector<8x8xf32>
    %151 = arith.select %21, %149, %150 : vector<8x8xi1>, vector<8x8xf32>
    %cst_42 = arith.constant dense<0xFF800000> : vector<8xf32>
    %152 = vector.multi_reduction <maximumf>, %151, %cst_42 [1] : vector<8x8xf32> to vector<8xf32>
    %153 = vector.shape_cast %152 : vector<8xf32> to vector<8x1xf32>
    %154 = vector.broadcast %153 : vector<8x1xf32> to vector<8x8xf32>
    %155 = arith.subf %151, %154 : vector<8x8xf32>
    %156 = math.exp %155 : vector<8x8xf32>
    %cst_43 = arith.constant dense<0.000000e+00> : vector<8xf32>
    %157 = vector.multi_reduction <add>, %156, %cst_43 [1] : vector<8x8xf32> to vector<8xf32>
    %158 = vector.shape_cast %157 : vector<8xf32> to vector<8x1xf32>
    %159 = vector.broadcast %158 : vector<8x1xf32> to vector<8x8xf32>
    %160 = arith.divf %156, %159 : vector<8x8xf32>
    %cst_44 = arith.constant dense<0.000000e+00> : vector<8x16xf32>
    %161 = tpu.matmul %160, %145, %cst_44 {dimension_numbers = #tpu.dot_dimension_numbers<[1], [0], [0], [1], [0, 0, 1, 1], [], []>} : vector<8x8xf32>, vector<8x16xf32>, vector<8x16xf32> -> vector<8x16xf32>
    %162 = tpu.concatenate %56, %91, %126, %161 in 1 : vector<8x16xf32>, vector<8x16xf32>, vector<8x16xf32>, vector<8x16xf32> -> vector<8x64xf32>
    %c0_45 = arith.constant 0 : index
    %c0_46 = arith.constant 0 : index
    %163 = vector.load %arg5[%c0_45, %c0_46] : memref<64x64xf32, #tpu.memory_space<vmem>>, vector<64x64xf32>
    %cst_47 = arith.constant dense<0.000000e+00> : vector<8x64xf32>
    %164 = tpu.matmul %162, %163, %cst_47 {dimension_numbers = #tpu.dot_dimension_numbers<[1], [0], [0], [1], [0, 0, 1, 1], [], []>} : vector<8x64xf32>, vector<64x64xf32>, vector<8x64xf32> -> vector<8x64xf32>
    %165 = arith.addf %1, %164 : vector<8x64xf32>
    %c0_48 = arith.constant 0 : index
    %c0_49 = arith.constant 0 : index
    %166 = vector.load %arg3[%c0_48, %c0_49] : memref<1x64xf32, #tpu.memory_space<vmem>>, vector<1x64xf32>
    %167 = arith.mulf %165, %165 : vector<8x64xf32>
    %cst_50 = arith.constant dense<0.000000e+00> : vector<8xf32>
    %168 = vector.multi_reduction <add>, %167, %cst_50 [1] : vector<8x64xf32> to vector<8xf32>
    %169 = vector.shape_cast %168 : vector<8xf32> to vector<8x1xf32>
    %cst_51 = arith.constant 6.400000e+01 : f32
    %170 = vector.broadcast %cst_51 : f32 to vector<8x1xf32>
    %171 = arith.divf %169, %170 : vector<8x1xf32>
    %cst_52 = arith.constant 9.99999997E-7 : f32
    %172 = vector.broadcast %cst_52 : f32 to vector<8x1xf32>
    %173 = arith.addf %171, %172 : vector<8x1xf32>
    %174 = math.rsqrt %173 : vector<8x1xf32>
    %175 = vector.broadcast %174 : vector<8x1xf32> to vector<8x64xf32>
    %176 = arith.mulf %165, %175 : vector<8x64xf32>
    %177 = vector.broadcast %166 : vector<1x64xf32> to vector<8x64xf32>
    %178 = arith.mulf %176, %177 : vector<8x64xf32>
    %c0_53 = arith.constant 0 : index
    %c0_54 = arith.constant 0 : index
    %179 = vector.load %arg6[%c0_53, %c0_54] : memref<64x4xf32, #tpu.memory_space<vmem>>, vector<64x4xf32>
    %cst_55 = arith.constant dense<0.000000e+00> : vector<8x4xf32>
    %180 = tpu.matmul %178, %179, %cst_55 {dimension_numbers = #tpu.dot_dimension_numbers<[1], [0], [0], [1], [0, 0, 1, 1], [], []>} : vector<8x64xf32>, vector<64x4xf32>, vector<8x4xf32> -> vector<8x4xf32>
    %c0_56 = arith.constant 0 : index
    %c0_57 = arith.constant 0 : index
    %181 = vector.load %arg12[%c0_56, %c0_57] : memref<8x4xf32, #tpu.memory_space<vmem>>, vector<8x4xf32>
    tpu.vector_store %arg12[%c0_56, %c0_57], %180 {strides = array<i32>} : memref<8x4xf32, #tpu.memory_space<vmem>>, vector<8x4xf32>,
    %cst_58 = arith.constant dense<0xFF800000> : vector<8xf32>
    %182 = vector.multi_reduction <maximumf>, %180, %cst_58 [1] : vector<8x4xf32> to vector<8xf32>
    %183 = vector.shape_cast %182 : vector<8xf32> to vector<8x1xf32>
    %184 = vector.broadcast %183 : vector<8x1xf32> to vector<8x4xf32>
    %185 = arith.subf %180, %184 : vector<8x4xf32>
    %186 = math.exp %185 : vector<8x4xf32>
    %cst_59 = arith.constant dense<0.000000e+00> : vector<8xf32>
    %187 = vector.multi_reduction <add>, %186, %cst_59 [1] : vector<8x4xf32> to vector<8xf32>
    %188 = vector.shape_cast %187 : vector<8xf32> to vector<8x1xf32>
    %189 = vector.broadcast %188 : vector<8x1xf32> to vector<8x4xf32>
    %190 = arith.divf %186, %189 : vector<8x4xf32>
    %191 = tpu.iota {dimensions = array<i32: 1>} : vector<8x4xi32>
    %192 = arith.sitofp %191 : vector<8x4xi32> to vector<8x4xf32>
    %cst_60 = arith.constant dense<0xFF800000> : vector<8xf32>
    %193 = vector.multi_reduction <maximumf>, %190, %cst_60 [1] : vector<8x4xf32> to vector<8xf32>
    %194 = vector.shape_cast %193 : vector<8xf32> to vector<8x1xf32>
    %195 = vector.broadcast %194 : vector<8x1xf32> to vector<8x4xf32>
    %196 = arith.cmpf oeq, %190, %195 : vector<8x4xf32>
    %cst_61 = arith.constant 4.000000e+00 : f32
    %197 = vector.broadcast %cst_61 : f32 to vector<8x4xf32>
    %198 = arith.select %196, %192, %197 : vector<8x4xi1>, vector<8x4xf32>
    %cst_62 = arith.constant dense<0x7F800000> : vector<8xf32>
    %199 = vector.multi_reduction <minimumf>, %198, %cst_62 [1] : vector<8x4xf32> to vector<8xf32>
    %200 = vector.shape_cast %199 : vector<8xf32> to vector<8x1xf32>
    %201 = vector.broadcast %200 : vector<8x1xf32> to vector<8x4xf32>
    %202 = arith.cmpf oeq, %192, %201 : vector<8x4xf32>
    %cst_63 = arith.constant 0xFF800000 : f32
    %203 = vector.broadcast %cst_63 : f32 to vector<8x4xf32>
    %204 = arith.select %202, %203, %190 : vector<8x4xi1>, vector<8x4xf32>
    %cst_64 = arith.constant dense<0xFF800000> : vector<8xf32>
    %205 = vector.multi_reduction <maximumf>, %204, %cst_64 [1] : vector<8x4xf32> to vector<8xf32>
    %206 = vector.shape_cast %205 : vector<8xf32> to vector<8x1xf32>
    %207 = vector.broadcast %206 : vector<8x1xf32> to vector<8x4xf32>
    %208 = arith.cmpf oeq, %204, %207 : vector<8x4xf32>
    %cst_65 = arith.constant 4.000000e+00 : f32
    %209 = vector.broadcast %cst_65 : f32 to vector<8x4xf32>
    %210 = arith.select %208, %192, %209 : vector<8x4xi1>, vector<8x4xf32>
    %cst_66 = arith.constant dense<0x7F800000> : vector<8xf32>
    %211 = vector.multi_reduction <minimumf>, %210, %cst_66 [1] : vector<8x4xf32> to vector<8xf32>
    %212 = vector.shape_cast %211 : vector<8xf32> to vector<8x1xf32>
    %213 = vector.broadcast %212 : vector<8x1xf32> to vector<8x4xf32>
    %214 = arith.cmpf oeq, %192, %213 : vector<8x4xf32>
    %215 = arith.addf %194, %206 : vector<8x1xf32>
    %cst_67 = arith.constant 0.000000e+00 : f32
    %216 = vector.shape_cast %194 : vector<8x1xf32> to vector<8x1xf32>
    %217 = vector.broadcast %216 : vector<8x1xf32> to vector<8x4xf32>
    %218 = vector.broadcast %cst_67 : f32 to vector<8x4xf32>
    %219 = arith.select %202, %217, %218 : vector<8x4xi1>, vector<8x4xf32>
    %cst_68 = arith.constant 0.000000e+00 : f32
    %220 = vector.shape_cast %206 : vector<8x1xf32> to vector<8x1xf32>
    %221 = vector.broadcast %220 : vector<8x1xf32> to vector<8x4xf32>
    %222 = vector.broadcast %cst_68 : f32 to vector<8x4xf32>
    %223 = arith.select %214, %221, %222 : vector<8x4xi1>, vector<8x4xf32>
    %224 = arith.addf %219, %223 : vector<8x4xf32>
    %225 = vector.broadcast %215 : vector<8x1xf32> to vector<8x4xf32>
    %226 = arith.divf %224, %225 : vector<8x4xf32>
    %cst_69 = arith.constant 0.000000e+00 : f32
    %227 = vector.broadcast %cst_69 : f32 to vector<8x64xf32>
    %c0_70 = arith.constant 0 : index
    %c0_71 = arith.constant 0 : index
    %c0_72 = arith.constant 0 : index
    %228 = vector.load %arg7[%c0_70, %c0_71, %c0_72] : memref<4x64x256xf32, #tpu.memory_space<vmem>>, vector<1x64x256xf32>
    %229 = vector.shape_cast %228 : vector<1x64x256xf32> to vector<64x256xf32>
    %cst_73 = arith.constant dense<0.000000e+00> : vector<8x256xf32>
    %230 = tpu.matmul %178, %229, %cst_73 {dimension_numbers = #tpu.dot_dimension_numbers<[1], [0], [0], [1], [0, 0, 1, 1], [], []>} : vector<8x64xf32>, vector<64x256xf32>, vector<8x256xf32> -> vector<8x256xf32>
    %231 = vector.extract_strided_slice %230 {offsets = [0, 0], sizes = [8, 128], strides = [1, 1]} : vector<8x256xf32> to vector<8x128xf32>
    %232 = vector.extract_strided_slice %230 {offsets = [0, 128], sizes = [8, 128], strides = [1, 1]} : vector<8x256xf32> to vector<8x128xf32>
    %233 = arith.negf %231 : vector<8x128xf32>
    %234 = math.exp %233 : vector<8x128xf32>
    %cst_74 = arith.constant 1.000000e+00 : f32
    %235 = vector.broadcast %cst_74 : f32 to vector<8x128xf32>
    %236 = arith.addf %235, %234 : vector<8x128xf32>
    %237 = arith.divf %235, %236 : vector<8x128xf32>
    %238 = arith.mulf %231, %237 : vector<8x128xf32>
    %239 = arith.mulf %238, %232 : vector<8x128xf32>
    %c0_75 = arith.constant 0 : index
    %c0_76 = arith.constant 0 : index
    %c0_77 = arith.constant 0 : index
    %240 = vector.load %arg8[%c0_75, %c0_76, %c0_77] : memref<4x128x64xf32, #tpu.memory_space<vmem>>, vector<1x128x64xf32>
    %241 = vector.shape_cast %240 : vector<1x128x64xf32> to vector<128x64xf32>
    %cst_78 = arith.constant dense<0.000000e+00> : vector<8x64xf32>
    %242 = tpu.matmul %239, %241, %cst_78 {dimension_numbers = #tpu.dot_dimension_numbers<[1], [0], [0], [1], [0, 0, 1, 1], [], []>} : vector<8x128xf32>, vector<128x64xf32>, vector<8x64xf32> -> vector<8x64xf32>
    %243 = vector.extract_strided_slice %226 {offsets = [0, 0], sizes = [8, 1], strides = [1, 1]} : vector<8x4xf32> to vector<8x1xf32>
    %244 = vector.broadcast %243 : vector<8x1xf32> to vector<8x64xf32>
    %245 = arith.mulf %244, %242 : vector<8x64xf32>
    %246 = arith.addf %227, %245 : vector<8x64xf32>
    %c1 = arith.constant 1 : index
    %c0_79 = arith.constant 0 : index
    %c0_80 = arith.constant 0 : index
    %247 = vector.load %arg7[%c1, %c0_79, %c0_80] : memref<4x64x256xf32, #tpu.memory_space<vmem>>, vector<1x64x256xf32>
    %248 = vector.shape_cast %247 : vector<1x64x256xf32> to vector<64x256xf32>
    %cst_81 = arith.constant dense<0.000000e+00> : vector<8x256xf32>
    %249 = tpu.matmul %178, %248, %cst_81 {dimension_numbers = #tpu.dot_dimension_numbers<[1], [0], [0], [1], [0, 0, 1, 1], [], []>} : vector<8x64xf32>, vector<64x256xf32>, vector<8x256xf32> -> vector<8x256xf32>
    %250 = vector.extract_strided_slice %249 {offsets = [0, 0], sizes = [8, 128], strides = [1, 1]} : vector<8x256xf32> to vector<8x128xf32>
    %251 = vector.extract_strided_slice %249 {offsets = [0, 128], sizes = [8, 128], strides = [1, 1]} : vector<8x256xf32> to vector<8x128xf32>
    %252 = arith.negf %250 : vector<8x128xf32>
    %253 = math.exp %252 : vector<8x128xf32>
    %cst_82 = arith.constant 1.000000e+00 : f32
    %254 = vector.broadcast %cst_82 : f32 to vector<8x128xf32>
    %255 = arith.addf %254, %253 : vector<8x128xf32>
    %256 = arith.divf %254, %255 : vector<8x128xf32>
    %257 = arith.mulf %250, %256 : vector<8x128xf32>
    %258 = arith.mulf %257, %251 : vector<8x128xf32>
    %c1_83 = arith.constant 1 : index
    %c0_84 = arith.constant 0 : index
    %c0_85 = arith.constant 0 : index
    %259 = vector.load %arg8[%c1_83, %c0_84, %c0_85] : memref<4x128x64xf32, #tpu.memory_space<vmem>>, vector<1x128x64xf32>
    %260 = vector.shape_cast %259 : vector<1x128x64xf32> to vector<128x64xf32>
    %cst_86 = arith.constant dense<0.000000e+00> : vector<8x64xf32>
    %261 = tpu.matmul %258, %260, %cst_86 {dimension_numbers = #tpu.dot_dimension_numbers<[1], [0], [0], [1], [0, 0, 1, 1], [], []>} : vector<8x128xf32>, vector<128x64xf32>, vector<8x64xf32> -> vector<8x64xf32>
    %262 = vector.extract_strided_slice %226 {offsets = [0, 1], sizes = [8, 1], strides = [1, 1]} : vector<8x4xf32> to vector<8x1xf32>
    %263 = vector.broadcast %262 : vector<8x1xf32> to vector<8x64xf32>
    %264 = arith.mulf %263, %261 : vector<8x64xf32>
    %265 = arith.addf %246, %264 : vector<8x64xf32>
    %c2 = arith.constant 2 : index
    %c0_87 = arith.constant 0 : index
    %c0_88 = arith.constant 0 : index
    %266 = vector.load %arg7[%c2, %c0_87, %c0_88] : memref<4x64x256xf32, #tpu.memory_space<vmem>>, vector<1x64x256xf32>
    %267 = vector.shape_cast %266 : vector<1x64x256xf32> to vector<64x256xf32>
    %cst_89 = arith.constant dense<0.000000e+00> : vector<8x256xf32>
    %268 = tpu.matmul %178, %267, %cst_89 {dimension_numbers = #tpu.dot_dimension_numbers<[1], [0], [0], [1], [0, 0, 1, 1], [], []>} : vector<8x64xf32>, vector<64x256xf32>, vector<8x256xf32> -> vector<8x256xf32>
    %269 = vector.extract_strided_slice %268 {offsets = [0, 0], sizes = [8, 128], strides = [1, 1]} : vector<8x256xf32> to vector<8x128xf32>
    %270 = vector.extract_strided_slice %268 {offsets = [0, 128], sizes = [8, 128], strides = [1, 1]} : vector<8x256xf32> to vector<8x128xf32>
    %271 = arith.negf %269 : vector<8x128xf32>
    %272 = math.exp %271 : vector<8x128xf32>
    %cst_90 = arith.constant 1.000000e+00 : f32
    %273 = vector.broadcast %cst_90 : f32 to vector<8x128xf32>
    %274 = arith.addf %273, %272 : vector<8x128xf32>
    %275 = arith.divf %273, %274 : vector<8x128xf32>
    %276 = arith.mulf %269, %275 : vector<8x128xf32>
    %277 = arith.mulf %276, %270 : vector<8x128xf32>
    %c2_91 = arith.constant 2 : index
    %c0_92 = arith.constant 0 : index
    %c0_93 = arith.constant 0 : index
    %278 = vector.load %arg8[%c2_91, %c0_92, %c0_93] : memref<4x128x64xf32, #tpu.memory_space<vmem>>, vector<1x128x64xf32>
    %279 = vector.shape_cast %278 : vector<1x128x64xf32> to vector<128x64xf32>
    %cst_94 = arith.constant dense<0.000000e+00> : vector<8x64xf32>
    %280 = tpu.matmul %277, %279, %cst_94 {dimension_numbers = #tpu.dot_dimension_numbers<[1], [0], [0], [1], [0, 0, 1, 1], [], []>} : vector<8x128xf32>, vector<128x64xf32>, vector<8x64xf32> -> vector<8x64xf32>
    %281 = vector.extract_strided_slice %226 {offsets = [0, 2], sizes = [8, 1], strides = [1, 1]} : vector<8x4xf32> to vector<8x1xf32>
    %282 = vector.broadcast %281 : vector<8x1xf32> to vector<8x64xf32>
    %283 = arith.mulf %282, %280 : vector<8x64xf32>
    %284 = arith.addf %265, %283 : vector<8x64xf32>
    %c3 = arith.constant 3 : index
    %c0_95 = arith.constant 0 : index
    %c0_96 = arith.constant 0 : index
    %285 = vector.load %arg7[%c3, %c0_95, %c0_96] : memref<4x64x256xf32, #tpu.memory_space<vmem>>, vector<1x64x256xf32>
    %286 = vector.shape_cast %285 : vector<1x64x256xf32> to vector<64x256xf32>
    %cst_97 = arith.constant dense<0.000000e+00> : vector<8x256xf32>
    %287 = tpu.matmul %178, %286, %cst_97 {dimension_numbers = #tpu.dot_dimension_numbers<[1], [0], [0], [1], [0, 0, 1, 1], [], []>} : vector<8x64xf32>, vector<64x256xf32>, vector<8x256xf32> -> vector<8x256xf32>
    %288 = vector.extract_strided_slice %287 {offsets = [0, 0], sizes = [8, 128], strides = [1, 1]} : vector<8x256xf32> to vector<8x128xf32>
    %289 = vector.extract_strided_slice %287 {offsets = [0, 128], sizes = [8, 128], strides = [1, 1]} : vector<8x256xf32> to vector<8x128xf32>
    %290 = arith.negf %288 : vector<8x128xf32>
    %291 = math.exp %290 : vector<8x128xf32>
    %cst_98 = arith.constant 1.000000e+00 : f32
    %292 = vector.broadcast %cst_98 : f32 to vector<8x128xf32>
    %293 = arith.addf %292, %291 : vector<8x128xf32>
    %294 = arith.divf %292, %293 : vector<8x128xf32>
    %295 = arith.mulf %288, %294 : vector<8x128xf32>
    %296 = arith.mulf %295, %289 : vector<8x128xf32>
    %c3_99 = arith.constant 3 : index
    %c0_100 = arith.constant 0 : index
    %c0_101 = arith.constant 0 : index
    %297 = vector.load %arg8[%c3_99, %c0_100, %c0_101] : memref<4x128x64xf32, #tpu.memory_space<vmem>>, vector<1x128x64xf32>
    %298 = vector.shape_cast %297 : vector<1x128x64xf32> to vector<128x64xf32>
    %cst_102 = arith.constant dense<0.000000e+00> : vector<8x64xf32>
    %299 = tpu.matmul %296, %298, %cst_102 {dimension_numbers = #tpu.dot_dimension_numbers<[1], [0], [0], [1], [0, 0, 1, 1], [], []>} : vector<8x128xf32>, vector<128x64xf32>, vector<8x64xf32> -> vector<8x64xf32>
    %300 = vector.extract_strided_slice %226 {offsets = [0, 3], sizes = [8, 1], strides = [1, 1]} : vector<8x4xf32> to vector<8x1xf32>
    %301 = vector.broadcast %300 : vector<8x1xf32> to vector<8x64xf32>
    %302 = arith.mulf %301, %299 : vector<8x64xf32>
    %303 = arith.addf %284, %302 : vector<8x64xf32>
    %304 = arith.addf %165, %303 : vector<8x64xf32>
    %c0_103 = arith.constant 0 : index
    %c0_104 = arith.constant 0 : index
    %c0_105 = arith.constant 0 : index
    %305 = vector.load %arg11[%c0_103, %c0_104, %c0_105] : memref<1x8x64xf32, #tpu.memory_space<vmem>>, vector<1x8x64xf32>
    %306 = vector.shape_cast %305 : vector<1x8x64xf32> to vector<8x64xf32>
    %307 = vector.shape_cast %304 : vector<8x64xf32> to vector<1x8x64xf32>
    tpu.vector_store %arg11[%c0_103, %c0_104, %c0_105], %307 {strides = array<i32>} : memref<1x8x64xf32, #tpu.memory_space<vmem>>, vector<1x8x64xf32>,
    return
  }
  func.func @transform_0(%arg0: i32) -> (i32, i32, i32) {
    %c0_i32 = arith.constant 0 : i32
    %c0_i32_0 = arith.constant 0 : i32
    %c0_i32_1 = arith.constant 0 : i32
    return %arg0, %c0_i32, %c0_i32_0 : i32, i32, i32
  }
  func.func @transform_1(%arg0: i32) -> (i32, i32) {
    %c0_i32 = arith.constant 0 : i32
    %c0_i32_0 = arith.constant 0 : i32
    %c0_i32_1 = arith.constant 0 : i32
    return %c0_i32, %c0_i32_0 : i32, i32
  }
  func.func @transform_2(%arg0: i32) -> (i32, i32) {
    %c0_i32 = arith.constant 0 : i32
    %c0_i32_0 = arith.constant 0 : i32
    %c0_i32_1 = arith.constant 0 : i32
    return %c0_i32, %c0_i32_0 : i32, i32
  }
  func.func @transform_3(%arg0: i32) -> (i32, i32) {
    %c0_i32 = arith.constant 0 : i32
    %c0_i32_0 = arith.constant 0 : i32
    %c0_i32_1 = arith.constant 0 : i32
    return %c0_i32, %c0_i32_0 : i32, i32
  }
  func.func @transform_4(%arg0: i32) -> (i32, i32) {
    %c0_i32 = arith.constant 0 : i32
    %c0_i32_0 = arith.constant 0 : i32
    %c0_i32_1 = arith.constant 0 : i32
    return %c0_i32, %c0_i32_0 : i32, i32
  }
  func.func @transform_5(%arg0: i32) -> (i32, i32) {
    %c0_i32 = arith.constant 0 : i32
    %c0_i32_0 = arith.constant 0 : i32
    %c0_i32_1 = arith.constant 0 : i32
    return %c0_i32, %c0_i32_0 : i32, i32
  }
  func.func @transform_6(%arg0: i32) -> (i32, i32, i32) {
    %c0_i32 = arith.constant 0 : i32
    %c0_i32_0 = arith.constant 0 : i32
    %c0_i32_1 = arith.constant 0 : i32
    %c0_i32_2 = arith.constant 0 : i32
    return %c0_i32, %c0_i32_0, %c0_i32_1 : i32, i32, i32
  }
  func.func @transform_7(%arg0: i32) -> (i32, i32, i32) {
    %c0_i32 = arith.constant 0 : i32
    %c0_i32_0 = arith.constant 0 : i32
    %c0_i32_1 = arith.constant 0 : i32
    %c0_i32_2 = arith.constant 0 : i32
    return %c0_i32, %c0_i32_0, %c0_i32_1 : i32, i32, i32
  }
  func.func @transform_8(%arg0: i32) -> (i32, i32) {
    %c0_i32 = arith.constant 0 : i32
    %c0_i32_0 = arith.constant 0 : i32
    %c0_i32_1 = arith.constant 0 : i32
    return %c0_i32, %c0_i32_0 : i32, i32
  }
  func.func @transform_9(%arg0: i32) -> (i32, i32) {
    %c0_i32 = arith.constant 0 : i32
    %c0_i32_0 = arith.constant 0 : i32
    %c0_i32_1 = arith.constant 0 : i32
    return %c0_i32, %c0_i32_0 : i32, i32
  }
  func.func @transform_10(%arg0: i32) -> (i32, i32, i32) {
    %c0_i32 = arith.constant 0 : i32
    %c0_i32_0 = arith.constant 0 : i32
    %c0_i32_1 = arith.constant 0 : i32
    return %arg0, %c0_i32, %c0_i32_0 : i32, i32, i32
  }
  func.func @transform_11(%arg0: i32) -> (i32, i32) {
    %c0_i32 = arith.constant 0 : i32
    %c0_i32_0 = arith.constant 0 : i32
    return %arg0, %c0_i32 : i32, i32
  }
}

</mosaic_0001>

<bundles_post_ra>
// kernel: decoder_layer_forward.1
= control target key start
LH: loop header
LB: loop body
LE: loop exit
PB: predicated region body
PF: predicated region fallthrough
CT: control target
= control target key end

     0   :  { %s2867_s0 = inlined_call_operand.vmem [shape: f32[2,8,64], index: 0, kind: input, shape index: {}]   ;;  %s2868_s1 = inlined_call_operand.vmem [shape: f32[1,64], index: 1, kind: input, shape index: {}]   ;;  %s2869_s2 = inlined_call_operand.vmem [shape: f32[1,64], index: 2, kind: input, shape index: {}]   ;;  %s2870_s3 = inlined_call_operand.vmem [shape: f32[64,192], index: 3, kind: input, shape index: {}]   ;;  %s2871_s4 = inlined_call_operand.vmem [shape: f32[64,64], index: 4, kind: input, shape index: {}]   ;;  %s2872_s5 = inlined_call_operand.vmem [shape: f32[64,4], index: 5, kind: input, shape index: {}]   ;;  %s2873_s6 = inlined_call_operand.vmem [shape: f32[4,64,256], index: 6, kind: input, shape index: {}]   ;;  %s2874_s7 = inlined_call_operand.vmem [shape: f32[4,128,64], index: 7, kind: input, shape index: {}]   ;;  %s2875_s8 = inlined_call_operand.vmem [shape: f32[8,16], index: 8, kind: input, shape index: {}]   ;;  %s2876_s9 = inlined_call_operand.vmem [shape: f32[8,16], index: 9, kind: input, shape index: {}]   ;;  %s2877_s10 = inlined_call_operand.hbm [shape: f32[2,8,64], index: 10, kind: output, shape index: {0}]   ;;  %s2878_s11 = inlined_call_operand.vmem [shape: f32[16,4], index: 11, kind: output, shape index: {1}]  }
   0x1   :  { %2881 = sst [smem:[#allocation5_spill]] %s2867_s0 }
   0x2   :  { %17 = vsyncpa [#allocation3], 0 }
   0x3   :  { %19 = vsyncpa [#allocation3 + $0x1], 0  ;;  %s2096_s17 = smov 0   ;;  %s2098_s18 = smov 0  }
   0x4   :  { %s2100_s19 = smov 0   ;;  %s2102_s20 = smov 0  }
   0x5 LB: > { %s2117_s21 = sadd.s32 4294967295, %s2014_s20   ;;  %s1707_s22 = sadd.s32 4294967294, %s2014_s20   ;;  %s2014_s20 = sphi %s2102_s20, %s2890_s20   ;;  %s2010_s19 = sphi %s2100_s19, %s2889_s19   ;;  %s2006_s18 = sphi %s2098_s18, %s2888_s18   ;;  %s2002_s17 = sphi %s2096_s17, %s2887_s17  }
   0x6   : > { %s2121_s23 = sadd.s32 1, %s2014_s20   ;;  %s247_s24 = sadd.s32 1, %s2010_s19 }
   0x7   : > { %s244_s25 = ssub.s32 %s2014_s20, %s2121_s23  ;;  %p257_p0 = scmp.ne.s32.totalorder %s2010_s19, %s2006_s18 }
   0x8   : > { %p245_p1 = scmp.eq.s32.totalorder %s244_s25, 0  ;;  %p258_p2 = scmp.eq.s32.totalorder %s2117_s21, 1 }
   0x9   : > { %p263_p3 = scmp.ne.s32.totalorder %s2006_s18, %s2002_s17  ;;  %p264_p4 = scmp.eq.s32.totalorder %s1707_s22, 1 }
   0xa   : > { %s2132_s26 = scalar_select %p245_p1, %s2010_s19, %s247_s24  }
   0xb   : > { %p2134_p5 = por %p258_p2, %p257_p0  ;;  %p2138_p6 = por %p264_p4, %p263_p3 }
   0xc   : > { %p1710_p7 = scmp.ge.s32.totalorder %s2014_s20, 1  ;;  %p342_p8 = scmp.lt.s32.totalorder %s2014_s20, 3 }
   0xe   : > { %p343_p9 = pnand %p1710_p7, %p342_p8 }
   0xf   : > { %p385_p10 = scmp.lt.s32.totalorder (!%p343_p9), %s2117_s21, 1  ;;  %s2884_s0 = sld [smem:[#allocation5_spill]] (!%p343_p9) }
  0x10   : > { %346 = sbr.rel (%p343_p9) target bundleno = 2952 (0xb88), region = 60  ;;  %s2880_s12 = smov (!%p343_p9), 72  }
  0x11   : > { %s2018_s13 = smov (!%p343_p9), 56   ;;  %s2019_s15 = smov (!%p343_p9), 64  }
  0x12   : > { %s2020_s16 = smov (!%p343_p9), 104   ;;  %s2021_s22 = smov (!%p343_p9), 8  }
  0x13   : > { %s2022_s24 = smov (!%p343_p9), 40   ;;  %s2024_s25 = smov (!%p343_p9), 88  }
  0x15   : > { %s2146_s29 = scalar_select %p385_p10, %s2117_s21, 1  ;;  %vm396_vm0 = vcmask 523264   ;;  %v2016_v3 = vmov 64.0   ;;  %v438_v5 = vld [vmem:[%s2870_s3 + $0x70] sm:$0xff]  ;;  %v439_v6 = vld [vmem:[%s2870_s3 + $0x78] sm:$0xff]  ;;  %v436_v7 = vld [vmem:[%s2870_s3 + $0x60] sm:$0xff] }
  0x16   : > { %1908 = vrcp.f32 %v2016_v3  ;;  %451 = vmatpush.msra.mxu0 %v438_v5  ;;  %471 = vmatpush.msra.mxu1 %v439_v6  ;;  %v437_v8 = vld [vmem:[%s2870_s3 + $0x68] sm:$0xff]  ;;  %v434_v10 = vld [vmem:[%s2870_s3 + $0x50] sm:$0xff]  ;;  %v435_v11 = vld [vmem:[%s2870_s3 + $0x58] sm:$0xff]  ;;  %vm499_vm5 = vcmask 64512   ;;  %vm525_vm6 = vcmask 130048  }
  0x17   : > { %s2879_s30 = sshll.u32 %s2146_s29, 3  ;;  %v432_v12 = vld [vmem:[%s2870_s3 + $0x40] sm:$0xff]  ;;  %v433_v13 = vld [vmem:[%s2870_s3 + $0x48] sm:$0xff]  ;;  %v430_v15 = vld [vmem:[%s2870_s3 + $0x30] sm:$0xff] }
  0x18   : > { %s388_s14 = scalar_lea.vmem %s2884_s0, %s2879_s30  ;;  %452 = vmatpush.msra.mxu0 %v436_v7  ;;  %472 = vmatpush.msra.mxu1 %v437_v8  ;;  %v431_v16 = vld [vmem:[%s2870_s3 + $0x38] sm:$0xff]  ;;  %v428_v17 = vld [vmem:[%s2870_s3 + $0x20] sm:$0xff]  ;;  %v429_v18 = vld [vmem:[%s2870_s3 + $0x28] sm:$0xff]  ;;  %s2023_s0 = smov 120  }
  0x19   : > { %v2154_v0 = vld [vmem:[%s388_s14] sm:$0xff]  ;;  %v426_v19 = vld [vmem:[%s2870_s3 + $0x10] sm:$0xff]  ;;  %v427_v20 = vld [vmem:[%s2870_s3 + $0x18] sm:$0xff]  ;;  %s2025_s14 = smov 24  }
  0x1a   : > { %v395_v1 = vmul.f32 %v2154_v0, %v2154_v0  ;;  %453 = vmatpush.msra.mxu0 %v434_v10  ;;  %473 = vmatpush.msra.mxu1 %v435_v11  ;;  %v424_v22 = vld [vmem:[%s2870_s3] sm:$0xff]  ;;  %v425_v23 = vld [vmem:[%s2870_s3 + $0x8] sm:$0xff] }
  0x1b   : > { %v1906_v35 = vld [vmem:[%s2868_s1] ss:$0 sm:$0xff] }
  0x1c   : > { %v397_v2 = vsel %vm396_vm0, %v395_v1, 0.0  ;;  %v1909_v4 = vpop.eup %1908  ;;  %454 = vmatpush.msra.mxu0 %v432_v12  ;;  %474 = vmatpush.msra.mxu1 %v433_v13  ;;  %v483_v42 = vld [vmem:[%s2875_s8] sm:$0xff] }
  0x1d   : > { %398 = vadd.xlane.f32.xlu0 %v397_v2  ;;  %v401_v9 = vmul.f32 64.0, %v1909_v4  ;;  %vm405_vm1 = vweird.f32 %v1909_v4  ;;  %v2237_v43 = vld [vmem:[%s2876_s9] sm:$0xff] }
  0x1e   : > { %455 = vmatpush.msra.mxu0 %v430_v15  ;;  %475 = vmatpush.msra.mxu1 %v431_v16 }
  0x1f   : > { %v402_v14 = vsub.f32 1.0, %v401_v9 }
  0x20   : > { %456 = vmatpush.msra.mxu0 %v428_v17  ;;  %476 = vmatpush.msra.mxu1 %v429_v18 }
  0x21   : > { %v403_v21 = vmul.f32 %v1909_v4, %v402_v14 }
  0x22   : > { %457 = vmatpush.msra.mxu0 %v426_v19  ;;  %477 = vmatpush.msra.mxu1 %v427_v20 }
  0x23   : > { %v404_v24 = vadd.f32 %v1909_v4, %v403_v21 }
  0x24   : > { %458 = vmatpush.msra.mxu0 %v424_v22  ;;  %478 = vmatpush.msra.mxu1 %v425_v23  ;;  %v485_v23 = vlaneseq }
  0x25   : > { %v2207_v25 = vsel %vm405_vm1, %v1909_v4, %v404_v24 }
  0x26   : > { %v2275_v24 = vshrl.u32 %v485_v23, 7 }
  0x90   : > { %v399_v26 = vpop.xlane.xlu0 %398 }
  0x91   : > { %v407_v27 = vmul.f32 %v2207_v25, %v399_v26  ;;  %v2277_v26 = vand.u32 127, %v485_v23 }
  0x93   : > { %v408_v28 = vadd.f32 1e-06, %v407_v27  ;;  %vm489_vm7 = vcmp.le.s32.totalorder %v2277_v26, %v2275_v24 }
  0x95   : > { %1910 = vrsqrt.f32 %v408_v28  ;;  %vm415_vm3 = vweird.f32 %v408_v28 }
  0x9b   : > { %v1911_v29 = vpop.eup %1910 }
  0x9c   : > { %v410_v30 = vmul.f32 %v1911_v29, %v408_v28  ;;  %vm416_vm2 = vweird.f32 %v1911_v29 }
  0x9d   : > { %vm417_vm4 = vmor %vm415_vm3, %vm416_vm2 }
  0x9e   : > { %v411_v31 = vmul.f32 %v1911_v29, %v410_v30 }
  0xa0   : > { %v412_v32 = vmul.f32 0.5, %v411_v31 }
  0xa2   : > { %v413_v33 = vsub.f32 1.5, %v412_v32 }
  0xa4   : > { %v414_v34 = vmul.f32 %v1911_v29, %v413_v33 }
  0xa6   : > { %v418_v36 = vsel %vm417_vm4, %v1911_v29, %v414_v34 }
  0xa7   : > { %v419_v37 = vmul.f32 %v418_v36, %v2154_v0 }
  0xa9   : > { %v423_v38 = vmul.f32 %v1906_v35, %v419_v37 }
  0xab   : > { %1714 = vmatmul.msk.f32.vlgmr.msra.gmra.mxu0 %vm396_vm0, %v423_v38  ;;  %1715 = vmatmul.msk.f32.vlgmr.msra.gmra.mxu1 %vm396_vm0, %v423_v38 }
 0x128   : > { %v2216_v39 = vpop.f32.mrf.mxu0  ;;  %v2218_v40 = vpop.f32.mrf.mxu1 }
 0x129   : > { %595 = vmatpush.msrb.mxu0 %v2218_v40  ;;  %507 = vrot.lane.b32.xlu1 %v2216_v39, %s2880_s12  ;;  %v490_v41 = vsub.f32 0.0, %v2216_v39  ;;  %s2885_s12 = smov 72   ;;  %v501_v57 = vmul.f32 %v483_v42, %v2216_v39 }
 0x12b   : > { %504 = vrot.lane.b32.xlu0 %v490_v41, %s2018_s13 }
 0x131   : > { %512 = vrot.lane.b32.xlu1 %v483_v42, %s2019_s15 }
 0x133   : > { %600 = vrot.lane.b32.xlu0 %v490_v41, %s2020_s16 }
 0x139   : > { %496 = vrot.lane.b32.xlu1 %v2216_v39, %s2021_s22 }
 0x13b   : > { %737 = vrot.lane.b32.xlu0 %v2216_v39, %s2022_s24 }
 0x141   : > { %617 = vrot.lane.b32.xlu1 %v490_v41, %s2022_s24  ;;  %s2027_s24 = smov 16  }
 0x143   : > { %850 = vrot.lane.b32.xlu0 %v490_v41, %s2021_s22  ;;  %s2026_s22 = smov 80  }
 0x149   : > { %603 = vrot.lane.b32.xlu1 %v2216_v39, %s2023_s0 }
 0x14b   : > { %836 = vrot.lane.b32.xlu0 %v2216_v39, %s2024_s25 }
 0x151   : > { %717 = vrot.lane.b32.xlu1 %v490_v41, %s2024_s25  ;;  %s2029_s25 = smov 32  }
 0x159   : > { %853 = vrot.lane.b32.xlu1 %v2216_v39, %s2025_s14 }
 0x19b   : > { %v508_v44 = vpop.permute.xlu1 %507 }
 0x19d   : > { %v505_v45 = vpop.permute.xlu0 %504 }
 0x19e   : > { %v510_v46 = vsel %vm499_vm5, %v505_v45, %v508_v44 }
 0x19f   : > { %v516_v47 = vmul.f32 %v510_v46, %v2237_v43 }
 0x1a1   : > { %518 = vrot.lane.b32.xlu2 %v516_v47, %s2019_s15 }
 0x1a3   : > { %v513_v48 = vpop.permute.xlu1 %512 }
 0x1a4   : > { %v515_v49 = vmul.f32 %v513_v48, %v2216_v39 }
 0x1a5   : > { %v601_v63 = vpop.permute.xlu0 %600 }
 0x1a9   : > { %492 = vrot.lane.b32.xlu2 %v490_v41, %s2023_s0  ;;  %s2028_s0 = smov 96  }
 0x1ab   : > { %v497_v52 = vpop.permute.xlu1 %496 }
 0x1ad   : > { %v738_v5 = vpop.permute.xlu0 %737 }
 0x1b3   : > { %v618_v58 = vpop.permute.xlu1 %617 }
 0x1b5   : > { %v851_v13 = vpop.permute.xlu0 %850 }
 0x1bb   : > { %v604_v1 = vpop.permute.xlu1 %603 }
 0x1bc   : > { %v606_v2 = vsel %vm499_vm5, %v601_v63, %v604_v1 }
 0x1bd   : > { %v611_v3 = vmul.f32 %v606_v2, %v2237_v43  ;;  %v837_v18 = vpop.permute.xlu0 %836 }
 0x1c3   : > { %v718_v7 = vpop.permute.xlu1 %717 }
 0x1cb   : > { %v854_v12 = vpop.permute.xlu1 %853 }
 0x1cc   : > { %v856_v14 = vsel %vm499_vm5, %v851_v13, %v854_v12 }
 0x1cd   : > { %v861_v15 = vmul.f32 %v856_v14, %v2237_v43 }
 0x1fb   : > { %v519_v50 = vpop.permute.xlu2 %518 }
 0x1fc   : > { %v521_v51 = vadd.f32 %v519_v50, %v515_v49 }
 0x1fe   : > { %523 = vrot.lane.b32.xlu2 %v521_v51, %s2019_s15  ;;  %s2030_s15 = smov 112  }
 0x203   : > { %v493_v53 = vpop.permute.xlu2 %492 }
 0x204   : > { %v500_v54 = vsel %vm499_vm5, %v493_v53, %v497_v52 }
 0x205   : > { %v502_v55 = vmul.f32 %v500_v54, %v2237_v43 }
 0x206   : > { %620 = vrot.lane.b32.xlu2 %v2216_v39, %s2018_s13  ;;  %s2031_s13 = smov 48  }
 0x207   : > { %v503_v59 = vadd.f32 %v502_v55, %v501_v57 }
 0x20e   : > { %734 = vrot.lane.b32.xlu2 %v490_v41, %s2025_s14  ;;  %s1839_s14 = sshll.u32 %s2117_s21, 3 }
 0x216   : > { %720 = vrot.lane.b32.xlu2 %v2216_v39, %s2020_s16 }
 0x21e   : > { %833 = vrot.lane.b32.xlu2 %v490_v41, %s2885_s12  ;;  %s1616_s12 = scalar_lea.hbm %s2877_s10, %s1839_s14 }
 0x226   : > { %624 = vrot.lane.b32.xlu2 %v483_v42, %s2026_s22 }
 0x22e   : > { %607 = vrot.lane.b32.xlu2 %v483_v42, %s2027_s24 }
 0x236   : > { %741 = vrot.lane.b32.xlu2 %v483_v42, %s2028_s0 }
 0x23e   : > { %724 = vrot.lane.b32.xlu2 %v483_v42, %s2029_s25 }
 0x246   : > { %857 = vrot.lane.b32.xlu2 %v483_v42, %s2030_s15 }
 0x24e   : > { %840 = vrot.lane.b32.xlu2 %v483_v42, %s2031_s13 }
 0x258   : > { %v524_v56 = vpop.permute.xlu2 %523 }
 0x259   : > { %1716 = vmatpush.xpose.msk.msra.mxu2 %vm525_vm6, %v524_v56 }
 0x25c   : > { %1717 = vmatmul.msk.f32.vlgmr.msra.gmra.mxu2 %vm525_vm6, %v503_v59 }
 0x260   : > { %v621_v60 = vpop.permute.xlu2 %620 }
 0x261   : > { %v623_v61 = vsel %vm499_vm5, %v618_v58, %v621_v60 }
 0x262   : > { %v628_v62 = vmul.f32 %v623_v61, %v2237_v43 }
 0x264   : > { %630 = vrot.lane.b32.xlu0 %v628_v62, %s2026_s22 }
 0x268   : > { %v735_v4 = vpop.permute.xlu2 %734 }
 0x269   : > { %v740_v6 = vsel %vm499_vm5, %v735_v4, %v738_v5 }
 0x26a   : > { %v745_v8 = vmul.f32 %v740_v6, %v2237_v43 }
 0x26c   : > { %613 = vrot.lane.b32.xlu0 %v611_v3, %s2027_s24 }
 0x270   : > { %v721_v9 = vpop.permute.xlu2 %720 }
 0x271   : > { %v723_v10 = vsel %vm499_vm5, %v718_v7, %v721_v9 }
 0x272   : > { %v728_v11 = vmul.f32 %v723_v10, %v2237_v43 }
 0x274   : > { %747 = vrot.lane.b32.xlu0 %v745_v8, %s2028_s0 }
 0x278   : > { %v834_v16 = vpop.permute.xlu2 %833 }
 0x279   : > { %v839_v47 = vsel %vm499_vm5, %v834_v16, %v837_v18 }
 0x27a   : > { %v844_v48 = vmul.f32 %v839_v47, %v2237_v43 }
 0x27c   : > { %730 = vrot.lane.b32.xlu0 %v728_v11, %s2029_s25 }
 0x280   : > { %v625_v17 = vpop.permute.xlu2 %624 }
 0x281   : > { %v627_v20 = vmul.f32 %v625_v17, %v2216_v39 }
 0x284   : > { %863 = vrot.lane.b32.xlu0 %v861_v15, %s2030_s15 }
 0x288   : > { %v608_v19 = vpop.permute.xlu2 %607 }
 0x289   : > { %v610_v27 = vmul.f32 %v608_v19, %v2216_v39 }
 0x290   : > { %v742_v28 = vpop.permute.xlu2 %741 }
 0x291   : > { %v744_v35 = vmul.f32 %v742_v28, %v2216_v39 }
 0x298   : > { %v725_v38 = vpop.permute.xlu2 %724 }
 0x299   : > { %v727_v49 = vmul.f32 %v725_v38, %v2216_v39 }
 0x2a0   : > { %v858_v42 = vpop.permute.xlu2 %857 }
 0x2a1   : > { %v860_v44 = vmul.f32 %v858_v42, %v2216_v39 }
 0x2a8   : > { %v841_v51 = vpop.permute.xlu2 %840 }
 0x2a9   : > { %v843_v60 = vmul.f32 %v841_v51, %v2216_v39 }
 0x2d6   : > { %v631_v21 = vpop.permute.xlu0 %630 }
 0x2d7   : > { %v633_v22 = vadd.f32 %v631_v21, %v627_v20 }
 0x2d9   : > { %638 = vrot.lane.b32.xlu2 %v633_v22, %s2031_s13 }
 0x2de   : > { %v614_v29 = vpop.permute.xlu0 %613 }
 0x2df   : > { %v616_v30 = vadd.f32 %v614_v29, %v610_v27  ;;  %v548_v31 = vpop.f32.mrf.mxu2 }
 0x2e0   : > { %v551_v32 = vmul.f32 0.25, %v548_v31 }
 0x2e1   : > { %635 = vrot.lane.b32.xlu2 %v616_v30, %s2030_s15 }
 0x2e2   : > { %v552_v33 = vsel %vm489_vm7, %v551_v32, -3.4028235e+38 }
 0x2e3   : > { %v553_v34 = vsel %vm499_vm5, %v552_v33, -inf }
 0x2e4   : > { %554 = vmax.xlane.f32.xlu1 %v553_v34 }
 0x2e6   : > { %v748_v36 = vpop.permute.xlu0 %747 }
 0x2e7   : > { %v750_v37 = vadd.f32 %v748_v36, %v744_v35 }
 0x2e9   : > { %755 = vrot.lane.b32.xlu2 %v750_v37, %s2029_s25 }
 0x2ee   : > { %v731_v41 = vpop.permute.xlu0 %730 }
 0x2ef   : > { %v733_v50 = vadd.f32 %v731_v41, %v727_v49 }
 0x2f6   : > { %v864_v45 = vpop.permute.xlu0 %863 }
 0x2f7   : > { %v866_v46 = vadd.f32 %v864_v45, %v860_v44 }
 0x2f9   : > { %871 = vrot.lane.b32.xlu2 %v866_v46, %s2027_s24 }
 0x2fd   : > { %846 = vrot.lane.b32.xlu1 %v844_v48, %s2031_s13 }
 0x305   : > { %752 = vrot.lane.b32.xlu1 %v733_v50, %s2028_s0 }
 0x333   : > { %v639_v52 = vpop.permute.xlu2 %638 }
 0x334   : > { %1719 = vmatpush.xpose.msk.msra.mxu3 %vm525_vm6, %v639_v52 }
 0x33b   : > { %v636_v53 = vpop.permute.xlu2 %635 }
 0x33c   : > { %1720 = vmatmul.msk.f32.vlgmr.msra.gmra.mxu3 %vm525_vm6, %v636_v53 }
 0x343   : > { %v756_v54 = vpop.permute.xlu2 %755 }
 0x344   : > { %1722 = vmatpush.xpose.msk.msrb.mxu3 %vm525_vm6, %v756_v54 }
 0x353   : > { %v872_v55 = vpop.permute.xlu2 %871 }
 0x354   : > { %1725 = vmatpush.xpose.msk.msra.mxu0 %vm525_vm6, %v872_v55 }
 0x357   : > { %v555_v43 = vpop.xlane.xlu1 %554 }
 0x358   : > { %v556_v56 = vsub.f32 %v552_v33, %v555_v43 }
 0x35a   : > { %v557_v57 = vmul.f32 1.442695, %v556_v56 }
 0x35c   : > { %1912 = vpow2.f32 %v557_v57 }
 0x362   : > { %v1913_v58 = vpop.eup %1912 }
 0x363   : > { %v559_v59 = vsel %vm499_vm5, %v1913_v58, 0.0 }
 0x364   : > { %560 = vadd.xlane.f32.xlu0 %v559_v59 }
 0x36f   : > { %v847_v61 = vpop.permute.xlu1 %846 }
 0x370   : > { %v849_v62 = vadd.f32 %v847_v61, %v843_v60 }
 0x372   : > { %868 = vrot.lane.b32.xlu1 %v849_v62, %s2026_s22 }
 0x377   : > { %v753_v63 = vpop.permute.xlu1 %752 }
 0x378   : > { %1723 = vmatmul.msk.f32.vlgmr.msrb.gmra.mxu3 %vm525_vm6, %v753_v63 }
 0x3bf   : > { %v661_v1 = vpop.f32.mrf.mxu3 }
 0x3c0   : > { %v664_v2 = vmul.f32 0.25, %v661_v1 }
 0x3c2   : > { %v665_v3 = vsel %vm489_vm7, %v664_v2, -3.4028235e+38 }
 0x3c3   : > { %v666_v4 = vsel %vm499_vm5, %v665_v3, -inf }
 0x3c4   : > { %667 = vmax.xlane.f32.xlu2 %v666_v4 }
 0x3d7   : > { %v561_v5 = vpop.xlane.xlu0 %560 }
 0x3d8   : > { %1914 = vrcp.f32 %v561_v5  ;;  %v573_v8 = vand.u32 2147483648, %v561_v5  ;;  %v571_v10 = vand.u32 2147483647, %v561_v5  ;;  %vm567_vm9 = vweird.f32 %v561_v5 }
 0x3da   : > { %v574_v12 = vor.u32 1.1754944e-38, %v573_v8  ;;  %vm572_vm11 = vcmp.eq.f32.partialorder %v571_v10, 8.507059e+37 }
 0x3dc   : > { %807 = vrot.lane.b32.xlu2 %v2218_v40, %s2028_s0 }
 0x3de   : > { %v1915_v39 = vpop.eup %1914 }
 0x3df   : > { %v563_v6 = vmul.f32 %v1915_v39, %v561_v5  ;;  %vm568_vm8 = vweird.f32 %v1915_v39 }
 0x3e0   : > { %vm569_vm10 = vmor %vm567_vm9, %vm568_vm8 }
 0x3e1   : > { %v564_v7 = vsub.f32 1.0, %v563_v6 }
 0x3e3   : > { %v565_v9 = vmul.f32 %v1915_v39, %v564_v7 }
 0x3e4   : > { %v869_v16 = vpop.permute.xlu1 %868 }
 0x3e5   : > { %v566_v11 = vadd.f32 %v1915_v39, %v565_v9 }
 0x3e7   : > { %v570_v13 = vsel %vm569_vm10, %v1915_v39, %v566_v11 }
 0x3e8   : > { %v575_v14 = vsel %vm572_vm11, %v574_v12, %v570_v13  ;;  %vm964_vm11 = vcmask 392192  }
 0x3e9   : > { %v576_v15 = vmul.f32 %v1913_v58, %v575_v14 }
 0x3eb   : > { %1718 = vmatmul.msk.f32.vlgmr.msrb.gmra.mxu0 %vm499_vm5, %v576_v15 }
 0x3f3   : > { %1726 = vmatmul.msk.f32.vlgmr.msra.gmra.mxu0 %vm525_vm6, %v869_v16 }
 0x3fb   : > { %v778_v17 = vpop.f32.mrf.mxu3 }
 0x3fc   : > { %v781_v18 = vmul.f32 0.25, %v778_v17 }
 0x3fe   : > { %v782_v19 = vsel %vm489_vm7, %v781_v18, -3.4028235e+38 }
 0x3ff   : > { %v783_v20 = vsel %vm499_vm5, %v782_v19, -inf }
 0x400   : > { %784 = vmax.xlane.f32.xlu1 %v783_v20 }
 0x419   : > { %923 = vrot.lane.b32.xlu1 %v2218_v40, %s2026_s22  ;;  %s2886_s22 = sshll.u32 %s2146_s29, 3 }
 0x437   : > { %v668_v21 = vpop.xlane.xlu2 %667 }
 0x438   : > { %v669_v22 = vsub.f32 %v665_v3, %v668_v21 }
 0x43a   : > { %v670_v23 = vmul.f32 1.442695, %v669_v22  ;;  %v973_v22 = vld [vmem:[%s2871_s4 + $0x38] sm:$0xff] }
 0x43b   : > { %985 = vmatpush.msra.mxu3 %v973_v22 }
 0x43c   : > { %1916 = vpow2.f32 %v670_v23  ;;  %v972_v23 = vld [vmem:[%s2871_s4 + $0x30] sm:$0xff] }
 0x43d   : > { %986 = vmatpush.msra.mxu3 %v972_v23 }
 0x43f   : > { %v808_v39 = vpop.permute.xlu2 %807 }
 0x442   : > { %v1917_v27 = vpop.eup %1916 }
 0x443   : > { %v672_v28 = vsel %vm499_vm5, %v1917_v27, 0.0 }
 0x444   : > { %673 = vadd.xlane.f32.xlu0 %v672_v28  ;;  %v970_v28 = vld [vmem:[%s2871_s4 + $0x20] sm:$0xff] }
 0x468   : > { %v2319_v29 = vpop.f32.mrf.mxu0 }
 0x470   : > { %v894_v30 = vpop.f32.mrf.mxu0 }
 0x471   : > { %v897_v31 = vmul.f32 0.25, %v894_v30  ;;  %v969_v30 = vld [vmem:[%s2871_s4 + $0x18] sm:$0xff] }
 0x473   : > { %v785_v32 = vpop.xlane.xlu1 %784  ;;  %v898_v33 = vsel %vm489_vm7, %v897_v31, -3.4028235e+38  ;;  %v968_v31 = vld [vmem:[%s2871_s4 + $0x10] sm:$0xff] }
 0x474   : > { %v786_v34 = vsub.f32 %v782_v19, %v785_v32  ;;  %v899_v35 = vsel %vm499_vm5, %v898_v33, -inf  ;;  %v967_v32 = vld [vmem:[%s2871_s4 + $0x8] sm:$0xff] }
 0x475   : > { %900 = vmax.xlane.f32.xlu0 %v899_v35 }
 0x476   : > { %v787_v36 = vmul.f32 1.442695, %v786_v34 }
 0x478   : > { %1918 = vpow2.f32 %v787_v36 }
 0x47e   : > { %v1919_v37 = vpop.eup %1918 }
 0x47f   : > { %v789_v38 = vsel %vm499_vm5, %v1919_v37, 0.0 }
 0x480   : > { %790 = vadd.xlane.f32.xlu0 %v789_v38 }
 0x48b   : > { %v924_v8 = vpop.permute.xlu1 %923 }
 0x4b7   : > { %v674_v41 = vpop.xlane.xlu0 %673 }
 0x4b8   : > { %v686_v57 = vand.u32 2147483648, %v674_v41  ;;  %vm680_vm13 = vweird.f32 %v674_v41  ;;  %v684_v58 = vand.u32 2147483647, %v674_v41 }
 0x4ba   : > { %v687_v61 = vor.u32 1.1754944e-38, %v686_v57  ;;  %vm685_vm15 = vcmp.eq.f32.partialorder %v684_v58, 8.507059e+37  ;;  %v1020_v57 = vld [vmem:[%s2872_s5] sm:$0xff] }
 0x4bb   : > { %v1116_v58 = vld [vmem:[%s2873_s6] sm:$0xff] }
 0x4e8   : > { %v901_v42 = vpop.xlane.xlu0 %900 }
 0x4e9   : > { %v902_v44 = vsub.f32 %v898_v33, %v901_v42  ;;  %v966_v33 = vld [vmem:[%s2871_s4] sm:$0xff]  ;;  %v1027_v42 = vld [vmem:[%s2872_s5 + $0x38] sm:$0xff] }
 0x4eb   : > { %v903_v45 = vmul.f32 1.442695, %v902_v44  ;;  %v1130_v44 = vld [vmem:[%s2873_s6 + $0x70] sm:$0xff] }
 0x4ec   : > { %1140 = vmatpush.msrb.mxu0 %v1130_v44  ;;  %v1779_v44 = vld [vmem:[%s2873_s6 + $0x158] sm:$0xff] }
 0x4ed   : > { %1920 = vpow2.f32 %v903_v45  ;;  %v1128_v45 = vld [vmem:[%s2873_s6 + $0x60] sm:$0xff] }
 0x4ee   : > { %1922 = vrcp.f32 %v674_v41  ;;  %1141 = vmatpush.msrb.mxu0 %v1128_v45  ;;  %v1776_v45 = vld [vmem:[%s2873_s6 + $0x140] sm:$0xff] }
 0x4f3   : > { %v1921_v46 = vpop.eup %1920  ;;  %v791_v24 = vpop.xlane.xlu0 %790 }
 0x4f4   : > { %v905_v47 = vsel %vm499_vm5, %v1921_v46, 0.0  ;;  %v1923_v48 = vpop.eup %1922  ;;  %1924 = vrcp.f32 %v791_v24  ;;  %v803_v2 = vand.u32 2147483648, %v791_v24  ;;  %vm797_vm2 = vweird.f32 %v791_v24 }
 0x4f5   : > { %906 = vadd.xlane.f32.xlu0 %v905_v47  ;;  %v676_v49 = vmul.f32 %v1923_v48, %v674_v41  ;;  %vm681_vm12 = vweird.f32 %v1923_v48  ;;  %v801_v3 = vand.u32 2147483647, %v791_v24 }
 0x4f6   : > { %vm682_vm14 = vmor %vm680_vm13, %vm681_vm12  ;;  %v804_v9 = vor.u32 1.1754944e-38, %v803_v2  ;;  %v1743_v2 = vld [vmem:[%s2873_s6 + $0xd0] sm:$0xff] }
 0x4f7   : > { %v677_v50 = vsub.f32 1.0, %v676_v49  ;;  %vm802_vm4 = vcmp.eq.f32.partialorder %v801_v3, 8.507059e+37  ;;  %v1025_v49 = vld [vmem:[%s2872_s5 + $0x28] sm:$0xff]  ;;  %v1744_v3 = vld [vmem:[%s2873_s6 + $0xd8] sm:$0xff] }
 0x4f9   : > { %v678_v53 = vmul.f32 %v1923_v48, %v677_v50  ;;  %v1126_v50 = vld [vmem:[%s2873_s6 + $0x50] sm:$0xff] }
 0x4fa   : > { %v1925_v52 = vpop.eup %1924  ;;  %1142 = vmatpush.msrb.mxu0 %v1126_v50  ;;  %v1772_v50 = vld [vmem:[%s2873_s6 + $0x120] sm:$0xff] }
 0x4fb   : > { %v793_v54 = vmul.f32 %v1925_v52, %v791_v24  ;;  %v679_v55 = vadd.f32 %v1923_v48, %v678_v53  ;;  %vm798_vm1 = vweird.f32 %v1925_v52  ;;  %v1122_v53 = vld [vmem:[%s2873_s6 + $0x30] sm:$0xff] }
 0x4fc   : > { %vm799_vm3 = vmor %vm797_vm2, %vm798_vm1 }
 0x4fd   : > { %v794_v43 = vsub.f32 1.0, %v793_v54  ;;  %v683_v60 = vsel %vm682_vm14, %v1923_v48, %v679_v55  ;;  %v1022_v54 = vld [vmem:[%s2872_s5 + $0x10] sm:$0xff]  ;;  %v1120_v55 = vld [vmem:[%s2873_s6 + $0x20] sm:$0xff]  ;;  %vm1051_vm14 = vcmask 31744  }
 0x4fe   : > { %v688_v62 = vsel %vm685_vm15, %v687_v61, %v683_v60  ;;  %v1748_v60 = vld [vmem:[%s2873_s6 + $0xf8] sm:$0xff]  ;;  %v1129_v61 = vld [vmem:[%s2873_s6 + $0x68] sm:$0xff] }
 0x4ff   : > { %v689_v5 = vmul.f32 %v1917_v27, %v688_v62  ;;  %v971_v27 = vld [vmem:[%s2871_s4 + $0x28] sm:$0xff]  ;;  %v1745_v62 = vld [vmem:[%s2873_s6 + $0xe0] sm:$0xff] }
 0x500   : > { %987 = vmatpush.msra.mxu3 %v971_v27 }
 0x502   : > { %988 = vmatpush.msra.mxu3 %v970_v28 }
 0x504   : > { %989 = vmatpush.msra.mxu3 %v969_v30 }
 0x506   : > { %990 = vmatpush.msra.mxu3 %v968_v31  ;;  %v1907_v31 = vld [vmem:[%s2869_s2] ss:$0 sm:$0xff] }
 0x508   : > { %991 = vmatpush.msra.mxu3 %v967_v32 }
 0x509   : > { %691 = vrot.lane.b32.xlu0 %v2218_v40, %s2030_s15  ;;  %v795_v40 = vmul.f32 %v1925_v52, %v794_v43  ;;  %v1021_v43 = vld [vmem:[%s2872_s5 + $0x8] sm:$0xff]  ;;  %s392_s15 = scalar_lea.vmem %s2878_s11, %s2886_s22 }
 0x50a   : > { %992 = vmatpush.msra.mxu3 %v966_v33 }
 0x50b   : > { %v796_v63 = vadd.f32 %v1925_v52, %v795_v40  ;;  %v1131_v40 = vld [vmem:[%s2873_s6 + $0x78] sm:$0xff] }
 0x50c   : > { %1160 = vmatpush.msrb.mxu1 %v1131_v40  ;;  %v1814_v40 = vld [vmem:[%s2873_s6 + $0x1d8] sm:$0xff] }
 0x50d   : > { %v800_v6 = vsel %vm799_vm3, %v1925_v52, %v796_v63  ;;  %v1023_v52 = vld [vmem:[%s2872_s5 + $0x18] sm:$0xff]  ;;  %v1746_v63 = vld [vmem:[%s2873_s6 + $0xe8] sm:$0xff] }
 0x50e   : > { %v805_v10 = vsel %vm802_vm4, %v804_v9, %v800_v6  ;;  %1161 = vmatpush.msrb.mxu1 %v1129_v61  ;;  %v1123_v6 = vld [vmem:[%s2873_s6 + $0x38] sm:$0xff]  ;;  %v1121_v9 = vld [vmem:[%s2873_s6 + $0x28] sm:$0xff]  ;;  %v1809_v61 = vld [vmem:[%s2873_s6 + $0x1b0] sm:$0xff] }
 0x50f   : > { %v806_v14 = vmul.f32 %v1919_v37, %v805_v10  ;;  %v1737_v10 = vld [vmem:[%s2873_s6 + $0xa0] sm:$0xff] }
 0x568   : > { %v907_v51 = vpop.xlane.xlu0 %906 }
 0x569   : > { %1926 = vrcp.f32 %v907_v51  ;;  %v919_v12 = vand.u32 2147483648, %v907_v51  ;;  %vm913_vm8 = vweird.f32 %v907_v51  ;;  %v917_v13 = vand.u32 2147483647, %v907_v51 }
 0x56b   : > { %v920_v16 = vor.u32 1.1754944e-38, %v919_v12  ;;  %vm918_vm10 = vcmp.eq.f32.partialorder %v917_v13, 8.507059e+37  ;;  %v1119_v12 = vld [vmem:[%s2873_s6 + $0x18] sm:$0xff]  ;;  %v1735_v13 = vld [vmem:[%s2873_s6 + $0x90] sm:$0xff] }
 0x56f   : > { %v1927_v56 = vpop.eup %1926 }
 0x570   : > { %v909_v59 = vmul.f32 %v1927_v56, %v907_v51  ;;  %vm914_vm7 = vweird.f32 %v1927_v56  ;;  %v1124_v51 = vld [vmem:[%s2873_s6 + $0x40] sm:$0xff] }
 0x571   : > { %vm915_vm9 = vmor %vm913_vm8, %vm914_vm7  ;;  %1143 = vmatpush.msrb.mxu0 %v1124_v51  ;;  %v1770_v51 = vld [vmem:[%s2873_s6 + $0x110] sm:$0xff] }
 0x572   : > { %v910_v1 = vsub.f32 1.0, %v909_v59  ;;  %v1747_v59 = vld [vmem:[%s2873_s6 + $0xf0] sm:$0xff] }
 0x573   : > { %1144 = vmatpush.msrb.mxu0 %v1122_v53  ;;  %v1768_v53 = vld [vmem:[%s2873_s6 + $0x100] sm:$0xff] }
 0x574   : > { %v911_v7 = vmul.f32 %v1927_v56, %v910_v1  ;;  %v1127_v1 = vld [vmem:[%s2873_s6 + $0x58] sm:$0xff] }
 0x575   : > { %1145 = vmatpush.msrb.mxu0 %v1120_v55  ;;  %1162 = vmatpush.msrb.mxu1 %v1127_v1  ;;  %v1817_v55 = vld [vmem:[%s2873_s6 + $0x1f0] sm:$0xff]  ;;  %v1808_v1 = vld [vmem:[%s2873_s6 + $0x1a8] sm:$0xff] }
 0x576   : > { %v912_v11 = vadd.f32 %v1927_v56, %v911_v7  ;;  %v1739_v7 = vld [vmem:[%s2873_s6 + $0xb0] sm:$0xff] }
 0x578   : > { %v916_v15 = vsel %vm915_vm9, %v1927_v56, %v912_v11  ;;  %v1118_v56 = vld [vmem:[%s2873_s6 + $0x10] sm:$0xff]  ;;  %v1738_v11 = vld [vmem:[%s2873_s6 + $0xa8] sm:$0xff] }
 0x579   : > { %v921_v17 = vsel %vm918_vm10, %v920_v16, %v916_v15  ;;  %1146 = vmatpush.msrb.mxu0 %v1118_v56  ;;  %v1117_v15 = vld [vmem:[%s2873_s6 + $0x8] sm:$0xff]  ;;  %v1733_v16 = vld [vmem:[%s2873_s6 + $0x80] sm:$0xff] }
 0x57a   : > { %v922_v18 = vmul.f32 %v1921_v46, %v921_v17  ;;  %v1734_v17 = vld [vmem:[%s2873_s6 + $0x88] sm:$0xff]  ;;  %v1815_v56 = vld [vmem:[%s2873_s6 + $0x1e0] sm:$0xff] }
 0x57b   : > { %v692_v4 = vpop.permute.xlu0 %691  ;;  %1147 = vmatpush.msrb.mxu0 %v1116_v58  ;;  %v1813_v58 = vld [vmem:[%s2873_s6 + $0x1d0] sm:$0xff] }
 0x57c   : > { %712 = vmatpush.msrb.mxu2 %v692_v4  ;;  %v1125_v4 = vld [vmem:[%s2873_s6 + $0x48] sm:$0xff] }
 0x57d   : > { %1721 = vmatmul.msk.f32.vlgmr.msrb.gmra.mxu2 %vm499_vm5, %v689_v5  ;;  %1281 = vmatpush.msra.mxu0 %v1748_v60  ;;  %v1741_v5 = vld [vmem:[%s2873_s6 + $0xc0] sm:$0xff]  ;;  %v1812_v60 = vld [vmem:[%s2873_s6 + $0x1c8] sm:$0xff] }
 0x57e   : > { %828 = vmatpush.msra.mxu2 %v808_v39  ;;  %v1742_v39 = vld [vmem:[%s2873_s6 + $0xc8] sm:$0xff]  ;;  %1163 = vmatpush.msrb.mxu1 %v1125_v4  ;;  %v1803_v4 = vld [vmem:[%s2873_s6 + $0x180] sm:$0xff] }
 0x57f   : > { %1282 = vmatpush.msra.mxu0 %v1746_v63  ;;  %v1807_v63 = vld [vmem:[%s2873_s6 + $0x1a0] sm:$0xff] }
 0x580   : > { %944 = vmatpush.msrb.mxu2 %v924_v8  ;;  %v1740_v8 = vld [vmem:[%s2873_s6 + $0xb8] sm:$0xff]  ;;  %1164 = vmatpush.msrb.mxu1 %v1123_v6  ;;  %v1203_v6 = vld [vmem:[%s2874_s7 + $0x50] sm:$0xff] }
 0x581   : > { %1283 = vmatpush.msra.mxu0 %v1744_v3  ;;  %v1806_v3 = vld [vmem:[%s2873_s6 + $0x198] sm:$0xff] }
 0x582   : > { %1165 = vmatpush.msrb.mxu1 %v1121_v9  ;;  %v1767_v9 = vld [vmem:[%s2874_s7 + $0xf8] sm:$0xff] }
 0x583   : > { %1284 = vmatpush.msra.mxu0 %v1742_v39  ;;  %v1204_v39 = vld [vmem:[%s2874_s7 + $0x58] sm:$0xff] }
 0x584   : > { %1166 = vmatpush.msrb.mxu1 %v1119_v12  ;;  %v1199_v12 = vld [vmem:[%s2874_s7 + $0x30] sm:$0xff] }
 0x585   : > { %1724 = vmatmul.msk.f32.vlgmr.msra.gmra.mxu2 %vm499_vm5, %v806_v14  ;;  %1285 = vmatpush.msra.mxu0 %v1740_v8  ;;  %v1736_v14 = vld [vmem:[%s2873_s6 + $0x98] sm:$0xff]  ;;  %v1201_v8 = vld [vmem:[%s2874_s7 + $0x40] sm:$0xff] }
 0x586   : > { %1039 = vmatpush.msra.mxu2 %v1027_v42  ;;  %1167 = vmatpush.msrb.mxu1 %v1117_v15  ;;  %v1778_v42 = vld [vmem:[%s2873_s6 + $0x150] sm:$0xff]  ;;  %v1764_v15 = vld [vmem:[%s2874_s7 + $0xe0] sm:$0xff] }
 0x587   : > { %1286 = vmatpush.msra.mxu0 %v1738_v11  ;;  %v1766_v11 = vld [vmem:[%s2874_s7 + $0xf0] sm:$0xff] }
 0x588   : > { %1331 = vmatpush.msra.mxu1 %v1767_v9 }
 0x589   : > { %1287 = vmatpush.msra.mxu0 %v1736_v14  ;;  %v1198_v14 = vld [vmem:[%s2874_s7 + $0x28] sm:$0xff] }
 0x58a   : > { %1332 = vmatpush.msra.mxu1 %v1766_v11  ;;  %v1829_v11 = vld [vmem:[%s2874_s7 + $0x1b8] sm:$0xff] }
 0x58b   : > { %1288 = vmatpush.msra.mxu0 %v1734_v17  ;;  %v1763_v17 = vld [vmem:[%s2874_s7 + $0xd8] sm:$0xff] }
 0x58d   : > { %1727 = vmatmul.msk.f32.vlgmr.msrb.gmra.mxu2 %vm499_vm5, %v922_v18  ;;  %vm962_vm5 = vcmask 261120  }
 0x600   : > { %v714_v19 = vpop.f32.mrf.mxu2 }
 0x601   : > { %950 = vrot.lane.b32.xlu0 %v714_v19, %s2027_s24  ;;  %s1620_s24 = sshll.u32 %s1616_s12, 4  ;;  %s1621_s24 = int_to_ptr.hbm [resolvable:$true] %s1620_s24 }
 0x608   : > { %v830_v20 = vpop.f32.mrf.mxu2 }
 0x609   : > { %954 = vrot.lane.b32.xlu2 %v830_v20, %s2029_s25  ;;  %s1966_s25 = sshra.s32 %s1621_s24, 4  ;;  %s1967_s25 = int_to_ptr.hbm [resolvable:$true] %s1966_s25 }
 0x60a   : > { %p1973_p0 = scmp.lt.s32.totalorder %s1967_s25, %s2877_s10 }
 0x610   : > { %v946_v21 = vpop.f32.mrf.mxu2 }
 0x611   : > { %958 = vrot.lane.b32.xlu0 %v946_v21, %s2031_s13  ;;  %s1968_s13 = scalar_lea.hbm %s1967_s25, 8 }
 0x612   : > { %p1969_p11 = scmp.ne.s32.totalorder %s1967_s25, %s1968_s13 }
 0x614   : > { %p1970_p12 = pnand %p1969_p11, %p2134_p5 }
 0x616   : > { %p1971_p13 = pneg %p1970_p12 }
 0x663   : > { %v955_v36 = vpop.permute.xlu2 %954 }
 0x673   : > { %v951_v34 = vpop.permute.xlu0 %950 }
 0x674   : > { %v961_v35 = vsel %vm525_vm6, %v2319_v29, %v951_v34  ;;  %v1026_v29 = vld [vmem:[%s2872_s5 + $0x30] sm:$0xff] }
 0x675   : > { %v963_v37 = vsel %vm962_vm5, %v961_v35, %v955_v36  ;;  %1040 = vmatpush.msra.mxu2 %v1026_v29  ;;  %v1783_v35 = vld [vmem:[%s2873_s6 + $0x178] sm:$0xff]  ;;  %v1780_v36 = vld [vmem:[%s2873_s6 + $0x160] sm:$0xff]  ;;  %v1206_v29 = vld [vmem:[%s2874_s7 + $0x68] sm:$0xff] }
 0x677   : > { %1041 = vmatpush.msra.mxu2 %v1025_v49  ;;  %v1205_v49 = vld [vmem:[%s2874_s7 + $0x60] sm:$0xff] }
 0x683   : > { %v959_v38 = vpop.permute.xlu0 %958 }
 0x684   : > { %v965_v41 = vsel %vm964_vm11, %v963_v37, %v959_v38  ;;  %v1208_v37 = vld [vmem:[%s2874_s7 + $0x78] sm:$0xff]  ;;  %v1781_v38 = vld [vmem:[%s2873_s6 + $0x168] sm:$0xff] }
 0x685   : > { %1728 = vmatmul.msk.f32.vlgmr.msra.gmra.mxu3 %vm396_vm0, %v965_v41  ;;  %v1207_v41 = vld [vmem:[%s2874_s7 + $0x70] sm:$0xff] }
 0x686   : > { %1209 = vmatpush.msrb.mxu3 %v1208_v37  ;;  %v1755_v37 = vld [vmem:[%s2874_s7 + $0x98] sm:$0xff] }
 0x688   : > { %1210 = vmatpush.msrb.mxu3 %v1207_v41  ;;  %v1798_v41 = vld [vmem:[%s2874_s7 + $0x158] sm:$0xff] }
 0x68a   : > { %1211 = vmatpush.msrb.mxu3 %v1206_v29  ;;  %v1753_v29 = vld [vmem:[%s2874_s7 + $0x88] sm:$0xff] }
 0x68c   : > { %1212 = vmatpush.msrb.mxu3 %v1205_v49  ;;  %v1795_v49 = vld [vmem:[%s2874_s7 + $0x140] sm:$0xff] }
 0x68e   : > { %1213 = vmatpush.msrb.mxu3 %v1204_v39 }
 0x690   : > { %1214 = vmatpush.msrb.mxu3 %v1203_v6 }
 0x708   : > { %v994_v46 = vpop.f32.mrf.mxu3 }
 0x709   : > { %v2375_v47 = vadd.f32 %v994_v46, %v2154_v0  ;;  %v1024_v0 = vld [vmem:[%s2872_s5 + $0x20] sm:$0xff]  ;;  %v1777_v46 = vld [vmem:[%s2873_s6 + $0x148] sm:$0xff] }
 0x70a   : > { %1042 = vmatpush.msra.mxu2 %v1024_v0  ;;  %v1773_v0 = vld [vmem:[%s2873_s6 + $0x128] sm:$0xff] }
 0x70b   : > { %v999_v24 = vmul.f32 %v2375_v47, %v2375_v47 }
 0x70c   : > { %1043 = vmatpush.msra.mxu2 %v1023_v52  ;;  %v1771_v52 = vld [vmem:[%s2873_s6 + $0x118] sm:$0xff] }
 0x70d   : > { %v1000_v48 = vsel %vm396_vm0, %v999_v24, 0.0  ;;  %v1774_v24 = vld [vmem:[%s2873_s6 + $0x130] sm:$0xff] }
 0x70e   : > { %1001 = vadd.xlane.f32.xlu1 %v1000_v48  ;;  %1044 = vmatpush.msra.mxu2 %v1022_v54  ;;  %v1775_v48 = vld [vmem:[%s2873_s6 + $0x138] sm:$0xff]  ;;  %v1769_v54 = vld [vmem:[%s2873_s6 + $0x108] sm:$0xff] }
 0x710   : > { %1045 = vmatpush.msra.mxu2 %v1021_v43  ;;  %v1818_v43 = vld [vmem:[%s2873_s6 + $0x1f8] sm:$0xff] }
 0x712   : > { %1046 = vmatpush.msra.mxu2 %v1020_v57  ;;  %v1816_v57 = vld [vmem:[%s2873_s6 + $0x1e8] sm:$0xff] }
 0x714   : > { %1261 = vmatpush.msrb.mxu2 %v1747_v59  ;;  %v1811_v59 = vld [vmem:[%s2873_s6 + $0x1c0] sm:$0xff] }
 0x716   : > { %1262 = vmatpush.msrb.mxu2 %v1745_v62  ;;  %v1810_v62 = vld [vmem:[%s2873_s6 + $0x1b8] sm:$0xff] }
 0x718   : > { %1263 = vmatpush.msrb.mxu2 %v1743_v2  ;;  %v1805_v2 = vld [vmem:[%s2873_s6 + $0x190] sm:$0xff] }
 0x71a   : > { %1264 = vmatpush.msrb.mxu2 %v1741_v5  ;;  %v1804_v5 = vld [vmem:[%s2873_s6 + $0x188] sm:$0xff] }
 0x71c   : > { %1265 = vmatpush.msrb.mxu2 %v1739_v7  ;;  %v1202_v7 = vld [vmem:[%s2874_s7 + $0x48] sm:$0xff] }
 0x71d   : > { %1215 = vmatpush.msrb.mxu3 %v1202_v7 }
 0x71e   : > { %1266 = vmatpush.msrb.mxu2 %v1737_v10  ;;  %v1200_v10 = vld [vmem:[%s2874_s7 + $0x38] sm:$0xff] }
 0x71f   : > { %1216 = vmatpush.msrb.mxu3 %v1201_v8 }
 0x720   : > { %1267 = vmatpush.msrb.mxu2 %v1735_v13  ;;  %v1765_v13 = vld [vmem:[%s2874_s7 + $0xe8] sm:$0xff] }
 0x721   : > { %1217 = vmatpush.msrb.mxu3 %v1200_v10  ;;  %1333 = vmatpush.msra.mxu1 %v1765_v13  ;;  %v1787_v10 = vld [vmem:[%s2874_s7 + $0x100] sm:$0xff] }
 0x722   : > { %1268 = vmatpush.msrb.mxu2 %v1733_v16  ;;  %v1197_v16 = vld [vmem:[%s2874_s7 + $0x20] sm:$0xff] }
 0x723   : > { %1218 = vmatpush.msrb.mxu3 %v1199_v12  ;;  %1334 = vmatpush.msra.mxu1 %v1764_v15  ;;  %v1828_v15 = vld [vmem:[%s2874_s7 + $0x1b0] sm:$0xff] }
 0x725   : > { %1219 = vmatpush.msrb.mxu3 %v1198_v14  ;;  %1335 = vmatpush.msra.mxu1 %v1763_v17 }
 0x727   : > { %1220 = vmatpush.msrb.mxu3 %v1197_v16 }
 0x781   : > { %v1002_v18 = vpop.xlane.xlu1 %1001 }
 0x782   : > { %v1003_v19 = vmul.f32 %v1002_v18, %v2207_v25  ;;  %v1782_v25 = vld [vmem:[%s2873_s6 + $0x170] sm:$0xff]  ;;  %v1196_v18 = vld [vmem:[%s2874_s7 + $0x18] sm:$0xff] }
 0x783   : > { %1221 = vmatpush.msrb.mxu3 %v1196_v18  ;;  %v1827_v18 = vld [vmem:[%s2874_s7 + $0x1a8] sm:$0xff] }
 0x784   : > { %v1004_v20 = vadd.f32 1e-06, %v1003_v19  ;;  %v1762_v19 = vld [vmem:[%s2874_s7 + $0xd0] sm:$0xff] }
 0x785   : > { %1336 = vmatpush.msra.mxu1 %v1762_v19 }
 0x786   : > { %1928 = vrsqrt.f32 %v1004_v20  ;;  %vm1011_vm12 = vweird.f32 %v1004_v20 }
 0x78c   : > { %v1929_v21 = vpop.eup %1928 }
 0x78d   : > { %v1006_v22 = vmul.f32 %v1929_v21, %v1004_v20  ;;  %vm1012_vm6 = vweird.f32 %v1929_v21  ;;  %v1195_v20 = vld [vmem:[%s2874_s7 + $0x10] sm:$0xff] }
 0x78e   : > { %vm1013_vm13 = vmor %vm1011_vm12, %vm1012_vm6  ;;  %1222 = vmatpush.msrb.mxu3 %v1195_v20 }
 0x78f   : > { %v1007_v23 = vmul.f32 %v1929_v21, %v1006_v22  ;;  %v1194_v22 = vld [vmem:[%s2874_s7 + $0x8] sm:$0xff] }
 0x790   : > { %1223 = vmatpush.msrb.mxu3 %v1194_v22 }
 0x791   : > { %v1008_v27 = vmul.f32 0.5, %v1007_v23  ;;  %v1760_v23 = vld [vmem:[%s2874_s7 + $0xc0] sm:$0xff] }
 0x793   : > { %v1009_v28 = vsub.f32 1.5, %v1008_v27  ;;  %v1193_v27 = vld [vmem:[%s2874_s7] sm:$0xff] }
 0x794   : > { %1224 = vmatpush.msrb.mxu3 %v1193_v27  ;;  %v1825_v27 = vld [vmem:[%s2874_s7 + $0x198] sm:$0xff] }
 0x795   : > { %v1010_v30 = vmul.f32 %v1929_v21, %v1009_v28  ;;  %v1759_v28 = vld [vmem:[%s2874_s7 + $0xb8] sm:$0xff] }
 0x797   : > { %v1014_v32 = vsel %vm1013_vm13, %v1929_v21, %v1010_v30  ;;  %v1761_v21 = vld [vmem:[%s2874_s7 + $0xc8] sm:$0xff]  ;;  %v1802_v30 = vld [vmem:[%s2874_s7 + $0x178] sm:$0xff] }
 0x798   : > { %v1015_v33 = vmul.f32 %v1014_v32, %v2375_v47  ;;  %1337 = vmatpush.msra.mxu1 %v1761_v21  ;;  %1452 = vmatpush.msra.mxu3 %v1802_v30  ;;  %v1801_v32 = vld [vmem:[%s2874_s7 + $0x170] sm:$0xff]  ;;  %v1826_v21 = vld [vmem:[%s2874_s7 + $0x1a0] sm:$0xff] }
 0x79a   : > { %v2493_v34 = vmul.f32 %v1907_v31, %v1015_v33  ;;  %1338 = vmatpush.msra.mxu1 %v1760_v23  ;;  %v1758_v31 = vld [vmem:[%s2874_s7 + $0xb0] sm:$0xff]  ;;  %1453 = vmatpush.msra.mxu3 %v1801_v32  ;;  %v1757_v33 = vld [vmem:[%s2874_s7 + $0xa8] sm:$0xff] }
 0x79b   : > { %v1824_v32 = vld [vmem:[%s2874_s7 + $0x190] sm:$0xff] }
 0x79c   : > { %1729 = vmatmul.msk.f32.vlgmr.msra.gmra.mxu2 %vm396_vm0, %v2493_v34  ;;  %1730 = vmatmul.msk.f32.vlgmr.msrb.gmra.mxu0 %vm396_vm0, %v2493_v34 }
 0x79d   : > { %1731 = vmatmul.msk.f32.vlgmr.msrb.gmra.mxu1 %vm396_vm0, %v2493_v34  ;;  %1382 = vmatpush.msra.mxu2 %v1782_v25  ;;  %v1756_v25 = vld [vmem:[%s2874_s7 + $0xa0] sm:$0xff] }
 0x79e   : > { %1402 = vmatpush.msrb.mxu0 %v1783_v35  ;;  %1339 = vmatpush.msra.mxu1 %v1759_v28  ;;  %v1799_v35 = vld [vmem:[%s2874_s7 + $0x160] sm:$0xff] }
 0x79f   : > { %1383 = vmatpush.msra.mxu2 %v1780_v36 }
 0x7a0   : > { %1403 = vmatpush.msrb.mxu0 %v1781_v38  ;;  %1340 = vmatpush.msra.mxu1 %v1758_v31 }
 0x7a1   : > { %1384 = vmatpush.msra.mxu2 %v1778_v42  ;;  %v1754_v42 = vld [vmem:[%s2874_s7 + $0x90] sm:$0xff] }
 0x7a2   : > { %1404 = vmatpush.msrb.mxu0 %v1779_v44  ;;  %1341 = vmatpush.msra.mxu1 %v1757_v33  ;;  %v1797_v44 = vld [vmem:[%s2874_s7 + $0x150] sm:$0xff] }
 0x7a3   : > { %1385 = vmatpush.msra.mxu2 %v1776_v45  ;;  %v1796_v45 = vld [vmem:[%s2874_s7 + $0x148] sm:$0xff] }
 0x7a4   : > { %1405 = vmatpush.msrb.mxu0 %v1777_v46  ;;  %1749 = vmatmul.msk.f32.vlgmr.msrb.gmra.mxu2 %vm396_vm0, %v2493_v34 }
 0x7a5   : > { %1750 = vmatmul.msk.f32.vlgmr.msra.gmra.mxu0 %vm396_vm0, %v2493_v34  ;;  %1386 = vmatpush.msra.mxu2 %v1774_v24  ;;  %v1752_v24 = vld [vmem:[%s2874_s7 + $0x80] sm:$0xff] }
 0x7a6   : > { %1406 = vmatpush.msrb.mxu0 %v1775_v48  ;;  %1342 = vmatpush.msra.mxu1 %v1756_v25  ;;  %v1823_v25 = vld [vmem:[%s2874_s7 + $0x188] sm:$0xff] }
 0x7a7   : > { %1387 = vmatpush.msra.mxu2 %v1772_v50  ;;  %v1837_v50 = vld [vmem:[%s2874_s7 + $0x1f8] sm:$0xff] }
 0x7a8   : > { %1407 = vmatpush.msrb.mxu0 %v1773_v0  ;;  %1343 = vmatpush.msra.mxu1 %v1755_v37 }
 0x7a9   : > { %1388 = vmatpush.msra.mxu2 %v1770_v51  ;;  %v1794_v51 = vld [vmem:[%s2874_s7 + $0x138] sm:$0xff] }
 0x7aa   : > { %1408 = vmatpush.msrb.mxu0 %v1771_v52  ;;  %1344 = vmatpush.msra.mxu1 %v1754_v42  ;;  %v1836_v52 = vld [vmem:[%s2874_s7 + $0x1f0] sm:$0xff] }
 0x7ab   : > { %1389 = vmatpush.msra.mxu2 %v1768_v53 }
 0x7ac   : > { %1409 = vmatpush.msrb.mxu0 %v1769_v54  ;;  %1784 = vmatmul.msk.f32.vlgmr.msra.gmra.mxu2 %vm396_vm0, %v2493_v34  ;;  %v1793_v54 = vld [vmem:[%s2874_s7 + $0x130] sm:$0xff] }
 0x7ad   : > { %1503 = vmatpush.msrb.mxu2 %v1817_v55  ;;  %1785 = vmatmul.msk.f32.vlgmr.msrb.gmra.mxu0 %vm396_vm0, %v2493_v34  ;;  %v1835_v55 = vld [vmem:[%s2874_s7 + $0x1e8] sm:$0xff] }
 0x7ae   : > { %1523 = vmatpush.msra.mxu0 %v1818_v43  ;;  %1345 = vmatpush.msra.mxu1 %v1753_v29  ;;  %v1792_v43 = vld [vmem:[%s2874_s7 + $0x128] sm:$0xff] }
 0x7af   : > { %1504 = vmatpush.msrb.mxu2 %v1815_v56  ;;  %v1834_v56 = vld [vmem:[%s2874_s7 + $0x1e0] sm:$0xff] }
 0x7b0   : > { %1524 = vmatpush.msra.mxu0 %v1816_v57  ;;  %1346 = vmatpush.msra.mxu1 %v1752_v24 }
 0x7b1   : > { %1505 = vmatpush.msrb.mxu2 %v1813_v58 }
 0x7b2   : > { %1525 = vmatpush.msra.mxu0 %v1814_v40  ;;  %1573 = vmatpush.msrb.mxu1 %v1837_v50  ;;  %v1791_v40 = vld [vmem:[%s2874_s7 + $0x120] sm:$0xff] }
 0x7b3   : > { %1506 = vmatpush.msrb.mxu2 %v1811_v59  ;;  %v1833_v59 = vld [vmem:[%s2874_s7 + $0x1d8] sm:$0xff] }
 0x7b4   : > { %1526 = vmatpush.msra.mxu0 %v1812_v60  ;;  %1574 = vmatpush.msrb.mxu1 %v1836_v52  ;;  %v1790_v60 = vld [vmem:[%s2874_s7 + $0x118] sm:$0xff] }
 0x7b5   : > { %1507 = vmatpush.msrb.mxu2 %v1809_v61  ;;  %v1832_v61 = vld [vmem:[%s2874_s7 + $0x1d0] sm:$0xff] }
 0x7b6   : > { %1527 = vmatpush.msra.mxu0 %v1810_v62  ;;  %1575 = vmatpush.msrb.mxu1 %v1835_v55 }
 0x7b7   : > { %1508 = vmatpush.msrb.mxu2 %v1807_v63 }
 0x7b8   : > { %1528 = vmatpush.msra.mxu0 %v1808_v1  ;;  %1576 = vmatpush.msrb.mxu1 %v1834_v56  ;;  %v1789_v1 = vld [vmem:[%s2874_s7 + $0x110] sm:$0xff] }
 0x7b9   : > { %1509 = vmatpush.msrb.mxu2 %v1805_v2  ;;  %v1831_v2 = vld [vmem:[%s2874_s7 + $0x1c8] sm:$0xff] }
 0x7ba   : > { %1529 = vmatpush.msra.mxu0 %v1806_v3  ;;  %1577 = vmatpush.msrb.mxu1 %v1833_v59 }
 0x7bb   : > { %1510 = vmatpush.msrb.mxu2 %v1803_v4  ;;  %v1788_v4 = vld [vmem:[%s2874_s7 + $0x108] sm:$0xff] }
 0x7bc   : > { %1530 = vmatpush.msra.mxu0 %v1804_v5  ;;  %1819 = vmatmul.msk.f32.vlgmr.msrb.gmra.mxu2 %vm396_vm0, %v2493_v34  ;;  %v1830_v5 = vld [vmem:[%s2874_s7 + $0x1c0] sm:$0xff] }
 0x7bd   : > { %1820 = vmatmul.msk.f32.vlgmr.msra.gmra.mxu0 %vm396_vm0, %v2493_v34  ;;  %v1800_v34 = vld [vmem:[%s2874_s7 + $0x168] sm:$0xff]  ;;  %1578 = vmatpush.msrb.mxu1 %v1832_v61 }
 0x7be   : > { %1454 = vmatpush.msra.mxu3 %v1800_v34 }
 0x7bf   : > { %1579 = vmatpush.msrb.mxu1 %v1831_v2 }
 0x7c0   : > { %1455 = vmatpush.msra.mxu3 %v1799_v35 }
 0x7c1   : > { %1580 = vmatpush.msrb.mxu1 %v1830_v5 }
 0x7c2   : > { %1456 = vmatpush.msra.mxu3 %v1798_v41 }
 0x7c3   : > { %1581 = vmatpush.msrb.mxu1 %v1829_v11 }
 0x7c4   : > { %1457 = vmatpush.msra.mxu3 %v1797_v44 }
 0x7c5   : > { %1582 = vmatpush.msrb.mxu1 %v1828_v15 }
 0x7c6   : > { %1458 = vmatpush.msra.mxu3 %v1796_v45 }
 0x7c7   : > { %1583 = vmatpush.msrb.mxu1 %v1827_v18 }
 0x7c8   : > { %1459 = vmatpush.msra.mxu3 %v1795_v49 }
 0x7c9   : > { %1584 = vmatpush.msrb.mxu1 %v1826_v21 }
 0x7ca   : > { %1460 = vmatpush.msra.mxu3 %v1794_v51 }
 0x7cb   : > { %1585 = vmatpush.msrb.mxu1 %v1825_v27 }
 0x7cc   : > { %1461 = vmatpush.msra.mxu3 %v1793_v54 }
 0x7cd   : > { %1586 = vmatpush.msrb.mxu1 %v1824_v32 }
 0x7ce   : > { %1462 = vmatpush.msra.mxu3 %v1792_v43 }
 0x7cf   : > { %1587 = vmatpush.msrb.mxu1 %v1823_v25 }
 0x7d0   : > { %1463 = vmatpush.msra.mxu3 %v1791_v40 }
 0x7d2   : > { %1464 = vmatpush.msra.mxu3 %v1790_v60 }
 0x7d4   : > { %1465 = vmatpush.msra.mxu3 %v1789_v1 }
 0x7d6   : > { %1466 = vmatpush.msra.mxu3 %v1788_v4 }
 0x7d8   : > { %1467 = vmatpush.msra.mxu3 %v1787_v10 }
 0x819   : > { %v2705_v36 = vpop.f32.mrf.mxu0 }
 0x81a   : > { %v1732_v38 = vmul.f32 -1.442695, %v2705_v36  ;;  %v1169_v22 = vpop.f32.mrf.mxu1 }
 0x81c   : > { %1930 = vpow2.f32 %v1732_v38 }
 0x81f   : > { %v2731_v46 = vpop.f32.mrf.mxu2 }
 0x820   : > { %1052 = vst.msk [vmem:[%s392_s15] sm:$0xff] %vm1051_vm14, %v2731_v46  ;;  %v1053_v48 = vsel %vm1051_vm14, %v2731_v46, -inf  ;;  %s376_s15 = sand.u32 1, %s2006_s18  }
 0x821   : > { %1054 = vmax.xlane.f32.xlu2 %v1053_v48  ;;  %s1711_s16 = sshll.u32 %s376_s15, 3  ;;  %s1602_s21 = scalar_lea.sflag [#allocation3], %s376_s15 }
 0x822   : > { %v1931_v0 = vpop.eup %1930  ;;  %s378_s22 = scalar_lea.vmem [#allocation2], %s1711_s16  ;;  %s1972_s16 = scalar_lea.hbm %s2877_s10, 16 }
 0x823   : > { %v1175_v53 = vadd.f32 1.0, %v1931_v0  ;;  %v1290_v0 = vpop.f32.mrf.mxu0  ;;  %s1618_s0 = sshll.u32 %s378_s22, 4  ;;  %p1974_p1 = scmp.lt.s32.totalorder %s1972_s16, %s1968_s13  ;;  %s1619_s0 = int_to_ptr.vmem [resolvable:$true] %s1618_s0 }
 0x825   : > { %1932 = vrcp.f32 %v1175_v53  ;;  %v1187_v39 = vand.u32 2147483648, %v1175_v53  ;;  %v1185_v8 = vand.u32 2147483647, %v1175_v53  ;;  %vm1181_vm1 = vweird.f32 %v1175_v53  ;;  %p1975_p2 = por %p1974_p1, %p1973_p0 }
 0x827   : > { %v2764_v57 = vpop.f32.mrf.mxu2  ;;  %v1188_v16 = vor.u32 1.1754944e-38, %v1187_v39  ;;  %vm1186_vm3 = vcmp.eq.f32.partialorder %v1185_v8, 8.507059e+37  ;;  %p1976_p3 = pnand %p1975_p2, %p1971_p13 }
 0x828   : > { %v1751_v58 = vmul.f32 -1.442695, %v2764_v57 }
 0x82a   : > { %1934 = vpow2.f32 %v1751_v58 }
 0x82b   : > { %v1933_v62 = vpop.eup %1932  ;;  %v1411_v61 = vpop.f32.mrf.mxu0 }
 0x82c   : > { %v1177_v63 = vmul.f32 %v1933_v62, %v1175_v53  ;;  %vm1182_vm15 = vweird.f32 %v1933_v62 }
 0x82d   : > { %vm1183_vm2 = vmor %vm1181_vm1, %vm1182_vm15 }
 0x82e   : > { %v1178_v3 = vsub.f32 1.0, %v1177_v63 }
 0x82f   : > { %v2791_v9 = vpop.f32.mrf.mxu2 }
 0x830   : > { %v1935_v6 = vpop.eup %1934  ;;  %v1179_v7 = vmul.f32 %v1933_v62, %v1178_v3  ;;  %v1786_v13 = vmul.f32 -1.442695, %v2791_v9 }
 0x831   : > { %v1296_v12 = vadd.f32 1.0, %v1935_v6 }
 0x832   : > { %v1180_v14 = vadd.f32 %v1933_v62, %v1179_v7 }
 0x833   : > { %1936 = vrcp.f32 %v1296_v12  ;;  %v1308_v35 = vand.u32 2147483648, %v1296_v12  ;;  %v1306_v38 = vand.u32 2147483647, %v1296_v12  ;;  %vm1302_vm7 = vweird.f32 %v1296_v12 }
 0x834   : > { %v1184_v17 = vsel %vm1183_vm2, %v1933_v62, %v1180_v14  ;;  %1938 = vpow2.f32 %v1786_v13 }
 0x835   : > { %v1189_v19 = vsel %vm1186_vm3, %v1188_v16, %v1184_v17  ;;  %v1309_v29 = vor.u32 1.1754944e-38, %v1308_v35  ;;  %vm1307_vm9 = vcmp.eq.f32.partialorder %v1306_v38, 8.507059e+37 }
 0x836   : > { %v1191_v20 = vmul.f32 %v1189_v19, %v2705_v36  ;;  %v1822_v36 = vld [vmem:[%s2874_s7 + $0x180] sm:$0xff] }
 0x837   : > { %1588 = vmatpush.msrb.mxu1 %v1822_v36 }
 0x838   : > { %v1192_v23 = vmul.f32 %v1191_v20, %v1169_v22 }
 0x839   : > { %v1937_v28 = vpop.eup %1936 }
 0x83a   : > { %v1939_v30 = vpop.eup %1938  ;;  %v1298_v31 = vmul.f32 %v1937_v28, %v1296_v12  ;;  %1225 = vmatmul.f32.vlgmr.msrb.gmra.mxu3 %v1192_v23  ;;  %vm1303_vm4 = vweird.f32 %v1937_v28  ;;  %v1532_v11 = vpop.f32.mrf.mxu0 }
 0x83b   : > { %v1417_v33 = vadd.f32 1.0, %v1939_v30  ;;  %vm1304_vm8 = vmor %vm1302_vm7, %vm1303_vm4 }
 0x83c   : > { %v1299_v34 = vsub.f32 1.0, %v1298_v31 }
 0x83d   : > { %1940 = vrcp.f32 %v1417_v33  ;;  %v1429_v54 = vand.u32 2147483648, %v1417_v33  ;;  %v1427_v43 = vand.u32 2147483647, %v1417_v33  ;;  %vm1423_vm5 = vweird.f32 %v1417_v33 }
 0x83e   : > { %v1300_v37 = vmul.f32 %v1937_v28, %v1299_v34 }
 0x83f   : > { %v1512_v41 = vpop.f32.mrf.mxu2  ;;  %v1430_v40 = vor.u32 1.1754944e-38, %v1429_v54  ;;  %vm1428_vm6 = vcmp.eq.f32.partialorder %v1427_v43, 8.507059e+37 }
 0x840   : > { %v1821_v42 = vmul.f32 -1.442695, %v1512_v41  ;;  %v1301_v44 = vadd.f32 %v1937_v28, %v1300_v37 }
 0x842   : > { %1942 = vpow2.f32 %v1821_v42  ;;  %v1305_v45 = vsel %vm1304_vm8, %v1937_v28, %v1301_v44 }
 0x843   : > { %v1941_v24 = vpop.eup %1940  ;;  %v1310_v48 = vsel %vm1307_vm9, %v1309_v29, %v1305_v45  ;;  %v2032_v29 = vmov 2   ;;  %v2033_v45 = vmov 1  }
 0x844   : > { %v1312_v49 = vmul.f32 %v1310_v48, %v2764_v57  ;;  %v1419_v50 = vmul.f32 %v1941_v24, %v1417_v33  ;;  %vm1424_vm10 = vweird.f32 %v1941_v24  ;;  %v1077_v33 = vcvt.s32.f32 %v2277_v26  ;;  %1903 = vset.pattern.permute.xlu1 %v2032_v29  ;;  %1902 = vset.pattern.permute.xlu0 %v2033_v45 }
 0x845   : > { %vm1425_vm11 = vmor %vm1423_vm5, %vm1424_vm10 }
 0x846   : > { %v1313_v51 = vmul.f32 %v1312_v49, %v1290_v0  ;;  %v1420_v52 = vsub.f32 1.0, %v1419_v50 }
 0x848   : > { %v1943_v53 = vpop.eup %1942  ;;  %v1421_v55 = vmul.f32 %v1941_v24, %v1420_v52  ;;  %1347 = vmatmul.f32.vlgmr.msra.gmra.mxu1 %v1313_v51 }
 0x849   : > { %v1538_v56 = vadd.f32 1.0, %v1943_v53 }
 0x84a   : > { %v1422_v58 = vadd.f32 %v1941_v24, %v1421_v55 }
 0x84b   : > { %1944 = vrcp.f32 %v1538_v56  ;;  %v1550_v3 = vand.u32 2147483648, %v1538_v56  ;;  %v1548_v5 = vand.u32 2147483647, %v1538_v56  ;;  %vm1544_vm13 = vweird.f32 %v1538_v56 }
 0x84c   : > { %v1426_v59 = vsel %vm1425_vm11, %v1941_v24, %v1422_v58  ;;  %v2034_v24 = vmov 0  }
 0x84d   : > { %v1431_v60 = vsel %vm1428_vm6, %v1430_v40, %v1426_v59  ;;  %v1551_v6 = vor.u32 1.1754944e-38, %v1550_v3  ;;  %vm1549_vm1 = vcmp.eq.f32.partialorder %v1548_v5, 8.507059e+37  ;;  %1901 = vset.pattern.permute.xlu2 %v2034_v24 }
 0x84e   : > { %v1433_v57 = vmul.f32 %v1431_v60, %v2791_v9 }
 0x850   : > { %v1434_v63 = vmul.f32 %v1433_v57, %v1411_v61  ;;  %v2035_v57 = vmov 3  }
 0x851   : > { %v1945_v62 = vpop.eup %1944 }
 0x852   : > { %v1540_v1 = vmul.f32 %v1945_v62, %v1538_v56  ;;  %1468 = vmatmul.f32.vlgmr.msra.gmra.mxu3 %v1434_v63  ;;  %vm1545_vm12 = vweird.f32 %v1945_v62 }
 0x853   : > { %vm1546_vm15 = vmor %vm1544_vm13, %vm1545_vm12 }
 0x854   : > { %v1541_v2 = vsub.f32 1.0, %v1540_v1 }
 0x856   : > { %v1542_v4 = vmul.f32 %v1945_v62, %v1541_v2 }
 0x858   : > { %v1543_v39 = vadd.f32 %v1945_v62, %v1542_v4 }
 0x85a   : > { %v1547_v7 = vsel %vm1546_vm15, %v1945_v62, %v1543_v39 }
 0x85b   : > { %v1552_v8 = vsel %vm1549_vm1, %v1551_v6, %v1547_v7 }
 0x85c   : > { %v1554_v10 = vmul.f32 %v1552_v8, %v1512_v41 }
 0x85e   : > { %v1555_v9 = vmul.f32 %v1554_v10, %v1532_v11 }
 0x860   : > { %1589 = vmatmul.f32.vlgmr.msrb.gmra.mxu1 %v1555_v9 }
 0x894   : > { %v1055_v12 = vpop.xlane.xlu2 %1054 }
 0x895   : > { %v1056_v13 = vsub.f32 %v2731_v46, %v1055_v12 }
 0x897   : > { %v1057_v14 = vmul.f32 1.442695, %v1056_v13 }
 0x899   : > { %1946 = vpow2.f32 %v1057_v14 }
 0x89f   : > { %v1947_v15 = vpop.eup %1946 }
 0x8a0   : > { %v1059_v16 = vsel %vm1051_vm14, %v1947_v15, 0.0 }
 0x8a1   : > { %1060 = vadd.xlane.f32.xlu0 %v1059_v16 }
 0x8bd   : > { %v1226_v62 = vpop.f32.mrf.mxu3 }
 0x8c5   : > { %v1348_v63 = vpop.f32.mrf.mxu1 }
 0x8d5   : > { %v1469_v5 = vpop.f32.mrf.mxu3 }
 0x8dd   : > { %v1590_v8 = vpop.f32.mrf.mxu1 }
 0x914   : > { %v1061_v17 = vpop.xlane.xlu0 %1060 }
 0x915   : > { %1948 = vrcp.f32 %v1061_v17  ;;  %v1073_v21 = vand.u32 2147483648, %v1061_v17  ;;  %v1071_v23 = vand.u32 2147483647, %v1061_v17  ;;  %vm1067_vm3 = vweird.f32 %v1061_v17 }
 0x917   : > { %v1074_v28 = vor.u32 1.1754944e-38, %v1073_v21  ;;  %vm1072_vm7 = vcmp.eq.f32.partialorder %v1071_v23, 8.507059e+37 }
 0x91b   : > { %v1949_v18 = vpop.eup %1948 }
 0x91c   : > { %v1063_v19 = vmul.f32 %v1949_v18, %v1061_v17  ;;  %vm1068_vm2 = vweird.f32 %v1949_v18 }
 0x91d   : > { %vm1069_vm4 = vmor %vm1067_vm3, %vm1068_vm2 }
 0x91e   : > { %v1064_v20 = vsub.f32 1.0, %v1063_v19 }
 0x920   : > { %v1065_v22 = vmul.f32 %v1949_v18, %v1064_v20 }
 0x922   : > { %v1066_v27 = vadd.f32 %v1949_v18, %v1065_v22 }
 0x924   : > { %v1070_v46 = vsel %vm1069_vm4, %v1949_v18, %v1066_v27 }
 0x925   : > { %v1075_v30 = vsel %vm1072_vm7, %v1074_v28, %v1070_v46 }
 0x926   : > { %v1076_v31 = vmul.f32 %v1947_v15, %v1075_v30 }
 0x928   : > { %v1078_v32 = vsel %vm1051_vm14, %v1076_v31, -inf }
 0x929   : > { %1079 = vmax.xlane.f32.xlu1 %v1078_v32 }
 0x99c   : > { %v1080_v34 = vpop.xlane.xlu1 %1079 }
 0x99d   : > { %vm1081_vm8 = vcmp.eq.f32.partialorder %v1076_v31, %v1080_v34 }
 0x99e   : > { %v1082_v25 = vsel %vm1081_vm8, %v1077_v33, 4.0 }
 0x99f   : > { %v1083_v35 = vsel %vm1051_vm14, %v1082_v25, inf }
 0x9a0   : > { %1084 = vmin.xlane.f32.xlu2 %v1083_v35 }
 0xa13   : > { %v1085_v36 = vpop.xlane.xlu2 %1084 }
 0xa14   : > { %vm1086_vm9 = vcmp.eq.f32.partialorder %v1077_v33, %v1085_v36 }
 0xa15   : > { %v1087_v37 = vsel %vm1086_vm9, -inf, %v1076_v31  ;;  %v1098_v43 = vsel %vm1086_vm9, %v1080_v34, 0.0 }
 0xa16   : > { %v1088_v38 = vsel %vm1051_vm14, %v1087_v37, -inf }
 0xa17   : > { %1089 = vmax.xlane.f32.xlu0 %v1088_v38 }
 0xa8a   : > { %v1090_v41 = vpop.xlane.xlu0 %1089 }
 0xa8b   : > { %vm1091_vm10 = vcmp.eq.f32.partialorder %v1087_v37, %v1090_v41  ;;  %v1097_v26 = vadd.f32 %v1090_v41, %v1080_v34 }
 0xa8c   : > { %v1092_v42 = vsel %vm1091_vm10, %v1077_v33, 4.0 }
 0xa8d   : > { %v1093_v44 = vsel %vm1051_vm14, %v1092_v42, inf  ;;  %1950 = vrcp.f32 %v1097_v26  ;;  %v1112_v52 = vand.u32 2147483648, %v1097_v26  ;;  %vm1106_vm11 = vweird.f32 %v1097_v26 }
 0xa8e   : > { %1094 = vmin.xlane.f32.xlu1 %v1093_v44  ;;  %v1110_v53 = vand.u32 2147483647, %v1097_v26 }
 0xa8f   : > { %v1113_v56 = vor.u32 1.1754944e-38, %v1112_v52 }
 0xa90   : > { %vm1111_vm12 = vcmp.eq.f32.partialorder %v1110_v53, 8.507059e+37 }
 0xa93   : > { %v1951_v48 = vpop.eup %1950 }
 0xa94   : > { %v1102_v49 = vmul.f32 %v1951_v48, %v1097_v26  ;;  %vm1107_vm5 = vweird.f32 %v1951_v48 }
 0xa95   : > { %vm1108_vm6 = vmor %vm1106_vm11, %vm1107_vm5 }
 0xa96   : > { %v1103_v50 = vsub.f32 1.0, %v1102_v49 }
 0xa98   : > { %v1104_v0 = vmul.f32 %v1951_v48, %v1103_v50 }
 0xa9a   : > { %v1105_v51 = vadd.f32 %v1951_v48, %v1104_v0 }
 0xa9c   : > { %v1109_v55 = vsel %vm1108_vm6, %v1951_v48, %v1105_v51 }
 0xa9d   : > { %v1114_v59 = vsel %vm1111_vm12, %v1113_v56, %v1109_v55 }
 0xb01   : > { %v1095_v54 = vpop.xlane.xlu1 %1094 }
 0xb02   : > { %vm1096_vm14 = vcmp.eq.f32.partialorder %v1077_v33, %v1095_v54 }
 0xb03   : > { %v1099_v58 = vsel %vm1096_vm14, %v1090_v41, 0.0 }
 0xb04   : > { %v1100_v40 = vadd.f32 %v1099_v58, %v1098_v43 }
 0xb06   : > { %v1115_v60 = vmul.f32 %v1114_v59, %v1100_v40 }
 0xb08   : > { %1473 = vperm.xlu1 %1903, %v1115_v60   ;;  %1352 = vperm.xlu0 %1902, %v1115_v60  }
 0xb09   : > { %1231 = vperm.xlu2 %1901, %v1115_v60  }
 0xb10   : > { %1905 = vset.pattern.permute.xlu0 %v2035_v57 }
 0xb11   : > { %1904 = vset.pattern.permute.xlu2 %v2035_v57 }
 0xb12   : > { %1594 = vperm.xlu2 %1904, %v1115_v60  }
 0xb63   : > { %v1232_v61 = vpop.permute.xlu2 %1231 }
 0xb64   : > { %v1234_v3 = vmul.f32 %v1232_v61, %v1226_v62 }
 0xb6c   : > { %v1595_v39 = vpop.permute.xlu2 %1594 }
 0xb6d   : > { %v1597_v10 = vmul.f32 %v1595_v39, %v1590_v8 }
 0xb7a   : > { %v1474_v1 = vpop.permute.xlu1 %1473  ;;  %v1353_v2 = vpop.permute.xlu0 %1352 }
 0xb7b   : > { %v1355_v4 = vmul.f32 %v1353_v2, %v1348_v63  ;;  %v1476_v6 = vmul.f32 %v1474_v1, %v1469_v5 }
 0xb7d   : > { %v1356_v7 = vadd.f32 %v1355_v4, %v1234_v3 }
 0xb7f   : > { %v1477_v11 = vadd.f32 %v1476_v6, %v1356_v7 }
 0xb81   : > { %v1598_v9 = vadd.f32 %v1597_v10, %v1477_v11 }
 0xb83   : > { %v1599_v12 = vadd.f32 %v1598_v9, %v2375_v47 }
 0xb85   : > { %1600 = vst.msk [vmem:[%s378_s22] sm:$0xff] %vm396_vm0, %v1599_v12 }
 0xb86   : > { %1979 = shalt.err (!%p1976_p3)
}
 0xb87   : > { %1842 = dma.vmem_to_hbm [thread:$0]  (%p2134_p5), %s1619_s0, 128, %s1621_s24, %s1602_s21  }
 0xb88 PF: > { %p1848_p4 = scmp.ge.s32.totalorder %s2014_s20, 2  ;;  %s1635_s15 = sand.u32 1, %s2002_s17  }
 0xb89   : > { %s1636_s22 = scalar_lea.sflag [#allocation3], %s1635_s15 }
 0xb8a   : > { %p1845_p7 = pnand %p1848_p4, %p2138_p6 }
 0xb8c   : > { %p1846_p8 = pneg %p1845_p7 }
 0xb8e   : > { %1997 = dma.done.wait (%p1846_p8), %s1636_s22, 128  }
 0xb8f   : > { %1999 = vsyncadd (%p1846_p8), %s1636_s22, 4294967168  ;;  %p22_p9 = scmp.ge.s32.totalorder %s2121_s23, 4   ;;  %s2887_s17 = smov %s2006_s18 }
 0xb90   : > { %s2888_s18 = smov %s2010_s19  ;;  %s2889_s19 = smov %s2132_s26 }
 0xb91   : > { %s2890_s20 = smov %s2121_s23  ;;  %24 = sbr.rel (!%p22_p9) target bundleno = 5 (0x5), region = 113 }
 0xb96   :  { %1649 = vsyncpa [#allocation3], 1 }
 0xb97   :  { %1651 = vsyncpa [#allocation3 + $0x1], 1 }

</bundles_post_ra>
